<compile_context>
chip_gen: v5e
topology: v5e:2x2
jax: 0.10.0
libtpu: 0.0.40
codegen_flags: <defaults>
</compile_context>

<pallas_src>
from functools import partial

import jax
import jax.numpy as jnp
from jax.experimental import pallas as pl
from jax.experimental.pallas import tpu as pltpu

# Make the pure-JAX reference matmuls f32-accurate so the self-check can be tight.
jax.config.update("jax_default_matmul_precision", "highest")

# ----------------------------- configuration --------------------------------
BATCH = 2            # batch_size
N_CHANNELS = 4       # raw input channels  (x: (B, n_channels, duration))
HOP = 4              # feature-extractor frame hop
N_TIMESTEPS = 512    # spectrogram width  (duration // HOP)
DURATION = N_TIMESTEPS * HOP
HEIGHT = 8           # spectrogram height
N_SPLIT = 2          # cfg.model.n_split
N_CLASSES = 3        # decoder output classes


# ----------------------------- fused kernel ---------------------------------
def _fused_kernel(n_channels, batch, t, n_split,
                  frames_ref, w_fe_ref, b_fe_ref, w_enc_ref, b_enc_ref,
                  w_dec_ref, b_dec_ref, o_ref):
    """Single invocation, everything lane-dense (batch*time on lanes).

    frames_ref: (HOP, C*B*T)          VMEM  de-interleaved frames, lane = c*B*T + b*T + t
    w_fe_ref:   (H, HOP)              VMEM  transposed feature-extractor weight
    b_fe_ref:   (H, 1)                VMEM
    w_enc_ref:  (C,)                  SMEM  pointwise-encoder scalar weights
    b_enc_ref:  (1,)                  SMEM
    w_dec_ref:  (K, (n_split+1)*H)    VMEM
    b_dec_ref:  (K, 1)                VMEM
    o_ref:      (K, B*T)              VMEM  logits, lane = b*T + t
    """
    h_dim, hop = w_fe_ref.shape
    k_cls = b_dec_ref.shape[0]
    bt = batch * t

    # ---- feature extractor (framing + linear + ReLU), one wide pass.
    #      Contraction depth HOP=4 -> exact-f32 VPU FMAs (no MXU fill/drain).
    feat = b_fe_ref[...] + w_fe_ref[:, 0:1] * frames_ref[0:1, :]
    for p in range(1, hop):
        feat = feat + w_fe_ref[:, p:p + 1] * frames_ref[p:p + 1, :]
    feat = jnp.maximum(feat, 0.0)                     # (H, C*B*T)

    # ---- pointwise encoder (smp.Unet stand-in, C -> 1): weighted channel sum
    #      with SMEM scalars; channel c is the lane block [c*B*T, (c+1)*B*T).
    xh = w_enc_ref[0] * feat[:, 0:bt]
    for c in range(1, n_channels):
        xh = xh + w_enc_ref[c] * feat[:, c * bt:(c + 1) * bt]
    xh = xh + b_enc_ref[0]                            # (H, B*T)

    # ---- decoder weights applied once per split copy.  The time-chunk swap is
    #      a column permutation, so it commutes with the channel-mixing decoder:
    #      W_si @ swap(xh) == swap(W_si @ xh).  Contraction depth H=8 -> VPU FMAs.
    y_blocks = []
    for si in range(n_split + 1):
        col = si * h_dim
        y = w_dec_ref[:, col:col + 1] * xh[0:1, :]
        for hh in range(1, h_dim):
            y = y + w_dec_ref[:, col + hh:col + hh + 1] * xh[hh:hh + 1, :]
        y_blocks.append(y)                            # (K, B*T)

    # base = W_0 @ xh - sum_si W_si @ xh   (the "split copy minus original" part)
    base = y_blocks[0]
    for si in range(1, n_split + 1):
        base = base - y_blocks[si]
    b_dec = b_dec_ref[...]                            # (K, 1)

    # ---- add the swapped contributions chunk-by-chunk and store.  All chunk
    #      boundaries are multiples of 128 lanes, so every slice and store is
    #      lane-tile aligned; no concatenates, no x_flat buffer.
    n_chunk = 2 ** n_split
    lmin = t // n_chunk
    for b in range(batch):
        for j in range(n_chunk):
            dst = b * t + j * lmin
            acc = base[:, dst:dst + lmin]
            for si in range(1, n_split + 1):
                src_j = j ^ (2 ** (n_split - si))     # swap-partner chunk for split si
                src = b * t + src_j * lmin
                acc = acc + y_blocks[si][:, src:src + lmin]
            o_ref[:, dst:dst + lmin] = acc + b_dec


# --------------------------------- forward ----------------------------------
def forward(x, params):
    """x: (B, n_channels, duration) -> {'logits': (B, n_timesteps, n_classes)}"""
    B, C, D = x.shape
    assert D % HOP == 0, "duration must be divisible by hop"
    T = D // HOP
    assert T % (2 ** N_SPLIT) == 0, "n_timesteps must divide by 2**n_split"
    assert (T // (2 ** N_SPLIT)) % 128 == 0, "swap chunks must be lane aligned"

    H = params["w_fe"].shape[1]
    K = params["w_dec"].shape[0]

    # Single host-side layout prep (64 KiB): de-interleave the hop axis and put
    # (channel, batch, time) on the lane axis -> exactly the layout the fused
    # one-pass kernel needs.  frames[hop, c*B*T + b*T + t] = x[b, c, t*HOP + hop].
    frames = x.reshape(B, C, T, HOP).transpose(3, 1, 0, 2).reshape(HOP, C * B * T)
    w_fe_t = params["w_fe"].T                         # (H, HOP)
    b_fe_t = params["b_fe"].T                         # (H, 1)
    w_enc = params["w_enc"][:, 0]                     # (C,)  -> SMEM scalars
    b_enc = params["b_enc"][0]                        # (1,)  -> SMEM scalar

    out = pl.pallas_call(
        partial(_fused_kernel, C, B, T, N_SPLIT),
        grid=(1,),                                    # one step: whole problem
        in_specs=[
            pl.BlockSpec((HOP, C * B * T), lambda i: (0, 0)),
            pl.BlockSpec((H, HOP), lambda i: (0, 0)),
            pl.BlockSpec((H, 1), lambda i: (0, 0)),
            pl.BlockSpec(memory_space=pltpu.MemorySpace.SMEM),
            pl.BlockSpec(memory_space=pltpu.MemorySpace.SMEM),
            pl.BlockSpec((K, (N_SPLIT + 1) * H), lambda i: (0, 0)),
            pl.BlockSpec((K, 1), lambda i: (0, 0)),
        ],
        out_specs=pl.BlockSpec((K, B * T), lambda i: (0, 0)),
        out_shape=jax.ShapeDtypeStruct((K, B * T), jnp.float32),
        compiler_params=pltpu.CompilerParams(
            dimension_semantics=("arbitrary",)),
    )(frames, w_fe_t, b_fe_t, w_enc, b_enc, params["w_dec"], params["b_dec"])

    # (K, B*T) -> (B, T, K): 12 KiB layout fixup outside the kernel, kept so the
    # in-kernel stores stay lane-dense (module contract wants time-major logits).
    logits = out.reshape(K, B, T).transpose(1, 2, 0)
    return {"logits": logits}

# TODO(synk): feature_extractor / smp.Unet encoder / decoder are abstract
# injected nn.Modules and are replaced by pointwise stand-ins; mixup / cutmix
# and the configurable loss functions are training-time branches (labels is
# None here) and are not part of the kernel forward path.  A decoder with a
# temporal receptive field would additionally require explicit per-chunk
# application (torch.split/cat semantics) instead of the full-T application.


# ------------------------- pure-JAX reference (check) -----------------------
def reference_forward(x, params):
    B, C, D = x.shape
    T = D // HOP
    frames = x.reshape(B, C, T, HOP)
    feat = jnp.maximum(frames @ params["w_fe"] + params["b_fe"][0], 0.0)   # (B,C,T,H)
    feat = feat.transpose(0, 1, 3, 2)                                       # (B,C,H,T)
    enc = jnp.einsum("bcht,cj->bhtj", feat, params["w_enc"])[..., 0]
    xh = enc + params["b_enc"][0, 0]                                        # (B,H,T)
    parts = [xh]
    for si in range(1, N_SPLIT + 1):
        ng = 2 ** si
        L = T // ng
        sw = xh.reshape(B, HEIGHT, ng // 2, 2, L)[:, :, :, ::-1, :].reshape(B, HEIGHT, T)
        parts.append(sw - xh)
    x_flat = jnp.stack(parts, axis=1).reshape(B, (N_SPLIT + 1) * HEIGHT, T)
    logits = jnp.einsum("bct,kc->btk", x_flat, params["w_dec"]) + params["b_dec"][:, 0]
    return logits


# ----------------------------------- main ------------------------------------
if __name__ == "__main__":
    key = jax.random.PRNGKey(0)
    kx, k1, k2, k3, k4, k5, k6 = jax.random.split(key, 7)

    params = {
        "w_fe": jax.random.normal(k1, (HOP, HEIGHT), jnp.float32) * 0.3,
        "b_fe": jax.random.normal(k2, (1, HEIGHT), jnp.float32) * 0.1,
        "w_enc": jax.random.normal(k3, (N_CHANNELS, 1), jnp.float32) * 0.3,
        "b_enc": jax.random.normal(k4, (1, 1), jnp.float32) * 0.1,
        "w_dec": jax.random.normal(k5, (N_CLASSES, (N_SPLIT + 1) * HEIGHT), jnp.float32) * 0.2,
        "b_dec": jax.random.normal(k6, (N_CLASSES, 1), jnp.float32) * 0.1,
    }

    x = jax.random.normal(kx, (BATCH, N_CHANNELS, DURATION), jnp.float32)

    out = jax.jit(forward)(x, params)
    logits = jax.block_until_ready(out["logits"])

    assert logits.shape == (BATCH, N_TIMESTEPS, N_CLASSES), logits.shape
    assert bool(jnp.all(jnp.isfinite(logits)))

    # Tightened from 5e-2 to 1e-4: the kernel's contractions are exact f32 on
    # the VPU and the reference runs at "highest" matmul precision, so any
    # bf16-level regression (~1e-2) would now be caught.
    ref = reference_forward(x, params)
    assert bool(jnp.allclose(logits, ref, rtol=1e-4, atol=1e-4)), (
        float(jnp.max(jnp.abs(logits - ref))))

    print("KERNEL_OK")
</pallas_src>

<mosaic_0001>
module attributes {stable_mosaic.version = 11 : i64} {
  func.func @_fused_kernel(%arg0: i32, %arg1: memref<4x4096xf32, #tpu.memory_space<vmem>>, %arg2: memref<8x4xf32, #tpu.memory_space<vmem>>, %arg3: memref<8x1xf32, #tpu.memory_space<vmem>>, %arg4: memref<4xf32, #tpu.memory_space<smem>>, %arg5: memref<1xf32, #tpu.memory_space<smem>>, %arg6: memref<3x24xf32, #tpu.memory_space<vmem>>, %arg7: memref<3x1xf32, #tpu.memory_space<vmem>>, %arg8: memref<3x1024xf32, #tpu.memory_space<vmem>>) attributes {dimension_semantics = [#tpu.dimension_semantics<arbitrary>], iteration_bounds = array<i64: 1>, scalar_prefetch = 0 : i64, scratch_operands = 0 : i64, tpu.core_type = #tpu.core_type<tc>, window_params = [{pipeline_mode = #tpu.pipeline_mode<synchronous>, transform_indices = @transform_0, window_bounds = array<i64: 4, 4096>}, {pipeline_mode = #tpu.pipeline_mode<synchronous>, transform_indices = @transform_1, window_bounds = array<i64: 8, 4>}, {pipeline_mode = #tpu.pipeline_mode<synchronous>, transform_indices = @transform_2, window_bounds = array<i64: 8, 1>}, {transform_indices = @transform_3, window_bounds = array<i64: 4>}, {transform_indices = @transform_4, window_bounds = array<i64: 1>}, {pipeline_mode = #tpu.pipeline_mode<synchronous>, transform_indices = @transform_5, window_bounds = array<i64: 3, 24>}, {pipeline_mode = #tpu.pipeline_mode<synchronous>, transform_indices = @transform_6, window_bounds = array<i64: 3, 1>}, {pipeline_mode = #tpu.pipeline_mode<synchronous>, transform_indices = @transform_7, window_bounds = array<i64: 3, 1024>}]} {
    %c0 = arith.constant 0 : index
    %c0_0 = arith.constant 0 : index
    %0 = vector.load %arg3[%c0, %c0_0] : memref<8x1xf32, #tpu.memory_space<vmem>>, vector<8x1xf32>
    %c0_1 = arith.constant 0 : index
    %c0_2 = arith.constant 0 : index
    %1 = vector.load %arg2[%c0_1, %c0_2] : memref<8x4xf32, #tpu.memory_space<vmem>>, vector<8x1xf32>
    %c0_3 = arith.constant 0 : index
    %c0_4 = arith.constant 0 : index
    %2 = vector.load %arg1[%c0_3, %c0_4] : memref<4x4096xf32, #tpu.memory_space<vmem>>, vector<1x4096xf32>
    %3 = vector.broadcast %1 : vector<8x1xf32> to vector<8x4096xf32>
    %4 = vector.broadcast %2 : vector<1x4096xf32> to vector<8x4096xf32>
    %5 = arith.mulf %3, %4 : vector<8x4096xf32>
    %6 = vector.broadcast %0 : vector<8x1xf32> to vector<8x4096xf32>
    %7 = arith.addf %6, %5 : vector<8x4096xf32>
    %c0_5 = arith.constant 0 : index
    %c1 = arith.constant 1 : index
    %8 = vector.load %arg2[%c0_5, %c1] : memref<8x4xf32, #tpu.memory_space<vmem>>, vector<8x1xf32>
    %c1_6 = arith.constant 1 : index
    %c0_7 = arith.constant 0 : index
    %9 = vector.load %arg1[%c1_6, %c0_7] : memref<4x4096xf32, #tpu.memory_space<vmem>>, vector<1x4096xf32>
    %10 = vector.broadcast %8 : vector<8x1xf32> to vector<8x4096xf32>
    %11 = vector.broadcast %9 : vector<1x4096xf32> to vector<8x4096xf32>
    %12 = arith.mulf %10, %11 : vector<8x4096xf32>
    %13 = arith.addf %7, %12 : vector<8x4096xf32>
    %c0_8 = arith.constant 0 : index
    %c2 = arith.constant 2 : index
    %14 = vector.load %arg2[%c0_8, %c2] : memref<8x4xf32, #tpu.memory_space<vmem>>, vector<8x1xf32>
    %c2_9 = arith.constant 2 : index
    %c0_10 = arith.constant 0 : index
    %15 = vector.load %arg1[%c2_9, %c0_10] : memref<4x4096xf32, #tpu.memory_space<vmem>>, vector<1x4096xf32>
    %16 = vector.broadcast %14 : vector<8x1xf32> to vector<8x4096xf32>
    %17 = vector.broadcast %15 : vector<1x4096xf32> to vector<8x4096xf32>
    %18 = arith.mulf %16, %17 : vector<8x4096xf32>
    %19 = arith.addf %13, %18 : vector<8x4096xf32>
    %c0_11 = arith.constant 0 : index
    %c3 = arith.constant 3 : index
    %20 = vector.load %arg2[%c0_11, %c3] : memref<8x4xf32, #tpu.memory_space<vmem>>, vector<8x1xf32>
    %c3_12 = arith.constant 3 : index
    %c0_13 = arith.constant 0 : index
    %21 = vector.load %arg1[%c3_12, %c0_13] : memref<4x4096xf32, #tpu.memory_space<vmem>>, vector<1x4096xf32>
    %22 = vector.broadcast %20 : vector<8x1xf32> to vector<8x4096xf32>
    %23 = vector.broadcast %21 : vector<1x4096xf32> to vector<8x4096xf32>
    %24 = arith.mulf %22, %23 : vector<8x4096xf32>
    %25 = arith.addf %19, %24 : vector<8x4096xf32>
    %cst = arith.constant 0.000000e+00 : f32
    %26 = vector.broadcast %cst : f32 to vector<8x4096xf32>
    %27 = arith.maximumf %25, %26 : vector<8x4096xf32>
    %c0_14 = arith.constant 0 : index
    %28 = memref.load %arg4[%c0_14] : memref<4xf32, #tpu.memory_space<smem>>
    %29 = vector.extract_strided_slice %27 {offsets = [0, 0], sizes = [8, 1024], strides = [1, 1]} : vector<8x4096xf32> to vector<8x1024xf32>
    %30 = vector.broadcast %28 : f32 to vector<8x1024xf32>
    %31 = arith.mulf %30, %29 : vector<8x1024xf32>
    %c1_15 = arith.constant 1 : index
    %32 = memref.load %arg4[%c1_15] : memref<4xf32, #tpu.memory_space<smem>>
    %33 = vector.extract_strided_slice %27 {offsets = [0, 1024], sizes = [8, 1024], strides = [1, 1]} : vector<8x4096xf32> to vector<8x1024xf32>
    %34 = vector.broadcast %32 : f32 to vector<8x1024xf32>
    %35 = arith.mulf %34, %33 : vector<8x1024xf32>
    %36 = arith.addf %31, %35 : vector<8x1024xf32>
    %c2_16 = arith.constant 2 : index
    %37 = memref.load %arg4[%c2_16] : memref<4xf32, #tpu.memory_space<smem>>
    %38 = vector.extract_strided_slice %27 {offsets = [0, 2048], sizes = [8, 1024], strides = [1, 1]} : vector<8x4096xf32> to vector<8x1024xf32>
    %39 = vector.broadcast %37 : f32 to vector<8x1024xf32>
    %40 = arith.mulf %39, %38 : vector<8x1024xf32>
    %41 = arith.addf %36, %40 : vector<8x1024xf32>
    %c3_17 = arith.constant 3 : index
    %42 = memref.load %arg4[%c3_17] : memref<4xf32, #tpu.memory_space<smem>>
    %43 = vector.extract_strided_slice %27 {offsets = [0, 3072], sizes = [8, 1024], strides = [1, 1]} : vector<8x4096xf32> to vector<8x1024xf32>
    %44 = vector.broadcast %42 : f32 to vector<8x1024xf32>
    %45 = arith.mulf %44, %43 : vector<8x1024xf32>
    %46 = arith.addf %41, %45 : vector<8x1024xf32>
    %c0_18 = arith.constant 0 : index
    %47 = memref.load %arg5[%c0_18] : memref<1xf32, #tpu.memory_space<smem>>
    %48 = vector.broadcast %47 : f32 to vector<8x1024xf32>
    %49 = arith.addf %46, %48 : vector<8x1024xf32>
    %c0_19 = arith.constant 0 : index
    %c0_20 = arith.constant 0 : index
    %50 = vector.load %arg6[%c0_19, %c0_20] : memref<3x24xf32, #tpu.memory_space<vmem>>, vector<3x1xf32>
    %51 = vector.extract_strided_slice %49 {offsets = [0, 0], sizes = [1, 1024], strides = [1, 1]} : vector<8x1024xf32> to vector<1x1024xf32>
    %52 = vector.broadcast %50 : vector<3x1xf32> to vector<3x1024xf32>
    %53 = vector.broadcast %51 : vector<1x1024xf32> to vector<3x1024xf32>
    %54 = arith.mulf %52, %53 : vector<3x1024xf32>
    %c0_21 = arith.constant 0 : index
    %c1_22 = arith.constant 1 : index
    %55 = vector.load %arg6[%c0_21, %c1_22] : memref<3x24xf32, #tpu.memory_space<vmem>>, vector<3x1xf32>
    %56 = vector.extract_strided_slice %49 {offsets = [1, 0], sizes = [1, 1024], strides = [1, 1]} : vector<8x1024xf32> to vector<1x1024xf32>
    %57 = vector.broadcast %55 : vector<3x1xf32> to vector<3x1024xf32>
    %58 = vector.broadcast %56 : vector<1x1024xf32> to vector<3x1024xf32>
    %59 = arith.mulf %57, %58 : vector<3x1024xf32>
    %60 = arith.addf %54, %59 : vector<3x1024xf32>
    %c0_23 = arith.constant 0 : index
    %c2_24 = arith.constant 2 : index
    %61 = vector.load %arg6[%c0_23, %c2_24] : memref<3x24xf32, #tpu.memory_space<vmem>>, vector<3x1xf32>
    %62 = vector.extract_strided_slice %49 {offsets = [2, 0], sizes = [1, 1024], strides = [1, 1]} : vector<8x1024xf32> to vector<1x1024xf32>
    %63 = vector.broadcast %61 : vector<3x1xf32> to vector<3x1024xf32>
    %64 = vector.broadcast %62 : vector<1x1024xf32> to vector<3x1024xf32>
    %65 = arith.mulf %63, %64 : vector<3x1024xf32>
    %66 = arith.addf %60, %65 : vector<3x1024xf32>
    %c0_25 = arith.constant 0 : index
    %c3_26 = arith.constant 3 : index
    %67 = vector.load %arg6[%c0_25, %c3_26] : memref<3x24xf32, #tpu.memory_space<vmem>>, vector<3x1xf32>
    %68 = vector.extract_strided_slice %49 {offsets = [3, 0], sizes = [1, 1024], strides = [1, 1]} : vector<8x1024xf32> to vector<1x1024xf32>
    %69 = vector.broadcast %67 : vector<3x1xf32> to vector<3x1024xf32>
    %70 = vector.broadcast %68 : vector<1x1024xf32> to vector<3x1024xf32>
    %71 = arith.mulf %69, %70 : vector<3x1024xf32>
    %72 = arith.addf %66, %71 : vector<3x1024xf32>
    %c0_27 = arith.constant 0 : index
    %c4 = arith.constant 4 : index
    %73 = vector.load %arg6[%c0_27, %c4] : memref<3x24xf32, #tpu.memory_space<vmem>>, vector<3x1xf32>
    %74 = vector.extract_strided_slice %49 {offsets = [4, 0], sizes = [1, 1024], strides = [1, 1]} : vector<8x1024xf32> to vector<1x1024xf32>
    %75 = vector.broadcast %73 : vector<3x1xf32> to vector<3x1024xf32>
    %76 = vector.broadcast %74 : vector<1x1024xf32> to vector<3x1024xf32>
    %77 = arith.mulf %75, %76 : vector<3x1024xf32>
    %78 = arith.addf %72, %77 : vector<3x1024xf32>
    %c0_28 = arith.constant 0 : index
    %c5 = arith.constant 5 : index
    %79 = vector.load %arg6[%c0_28, %c5] : memref<3x24xf32, #tpu.memory_space<vmem>>, vector<3x1xf32>
    %80 = vector.extract_strided_slice %49 {offsets = [5, 0], sizes = [1, 1024], strides = [1, 1]} : vector<8x1024xf32> to vector<1x1024xf32>
    %81 = vector.broadcast %79 : vector<3x1xf32> to vector<3x1024xf32>
    %82 = vector.broadcast %80 : vector<1x1024xf32> to vector<3x1024xf32>
    %83 = arith.mulf %81, %82 : vector<3x1024xf32>
    %84 = arith.addf %78, %83 : vector<3x1024xf32>
    %c0_29 = arith.constant 0 : index
    %c6 = arith.constant 6 : index
    %85 = vector.load %arg6[%c0_29, %c6] : memref<3x24xf32, #tpu.memory_space<vmem>>, vector<3x1xf32>
    %86 = vector.extract_strided_slice %49 {offsets = [6, 0], sizes = [1, 1024], strides = [1, 1]} : vector<8x1024xf32> to vector<1x1024xf32>
    %87 = vector.broadcast %85 : vector<3x1xf32> to vector<3x1024xf32>
    %88 = vector.broadcast %86 : vector<1x1024xf32> to vector<3x1024xf32>
    %89 = arith.mulf %87, %88 : vector<3x1024xf32>
    %90 = arith.addf %84, %89 : vector<3x1024xf32>
    %c0_30 = arith.constant 0 : index
    %c7 = arith.constant 7 : index
    %91 = vector.load %arg6[%c0_30, %c7] : memref<3x24xf32, #tpu.memory_space<vmem>>, vector<3x1xf32>
    %92 = vector.extract_strided_slice %49 {offsets = [7, 0], sizes = [1, 1024], strides = [1, 1]} : vector<8x1024xf32> to vector<1x1024xf32>
    %93 = vector.broadcast %91 : vector<3x1xf32> to vector<3x1024xf32>
    %94 = vector.broadcast %92 : vector<1x1024xf32> to vector<3x1024xf32>
    %95 = arith.mulf %93, %94 : vector<3x1024xf32>
    %96 = arith.addf %90, %95 : vector<3x1024xf32>
    %c0_31 = arith.constant 0 : index
    %c8 = arith.constant 8 : index
    %97 = vector.load %arg6[%c0_31, %c8] : memref<3x24xf32, #tpu.memory_space<vmem>>, vector<3x1xf32>
    %98 = vector.extract_strided_slice %49 {offsets = [0, 0], sizes = [1, 1024], strides = [1, 1]} : vector<8x1024xf32> to vector<1x1024xf32>
    %99 = vector.broadcast %97 : vector<3x1xf32> to vector<3x1024xf32>
    %100 = vector.broadcast %98 : vector<1x1024xf32> to vector<3x1024xf32>
    %101 = arith.mulf %99, %100 : vector<3x1024xf32>
    %c0_32 = arith.constant 0 : index
    %c9 = arith.constant 9 : index
    %102 = vector.load %arg6[%c0_32, %c9] : memref<3x24xf32, #tpu.memory_space<vmem>>, vector<3x1xf32>
    %103 = vector.extract_strided_slice %49 {offsets = [1, 0], sizes = [1, 1024], strides = [1, 1]} : vector<8x1024xf32> to vector<1x1024xf32>
    %104 = vector.broadcast %102 : vector<3x1xf32> to vector<3x1024xf32>
    %105 = vector.broadcast %103 : vector<1x1024xf32> to vector<3x1024xf32>
    %106 = arith.mulf %104, %105 : vector<3x1024xf32>
    %107 = arith.addf %101, %106 : vector<3x1024xf32>
    %c0_33 = arith.constant 0 : index
    %c10 = arith.constant 10 : index
    %108 = vector.load %arg6[%c0_33, %c10] : memref<3x24xf32, #tpu.memory_space<vmem>>, vector<3x1xf32>
    %109 = vector.extract_strided_slice %49 {offsets = [2, 0], sizes = [1, 1024], strides = [1, 1]} : vector<8x1024xf32> to vector<1x1024xf32>
    %110 = vector.broadcast %108 : vector<3x1xf32> to vector<3x1024xf32>
    %111 = vector.broadcast %109 : vector<1x1024xf32> to vector<3x1024xf32>
    %112 = arith.mulf %110, %111 : vector<3x1024xf32>
    %113 = arith.addf %107, %112 : vector<3x1024xf32>
    %c0_34 = arith.constant 0 : index
    %c11 = arith.constant 11 : index
    %114 = vector.load %arg6[%c0_34, %c11] : memref<3x24xf32, #tpu.memory_space<vmem>>, vector<3x1xf32>
    %115 = vector.extract_strided_slice %49 {offsets = [3, 0], sizes = [1, 1024], strides = [1, 1]} : vector<8x1024xf32> to vector<1x1024xf32>
    %116 = vector.broadcast %114 : vector<3x1xf32> to vector<3x1024xf32>
    %117 = vector.broadcast %115 : vector<1x1024xf32> to vector<3x1024xf32>
    %118 = arith.mulf %116, %117 : vector<3x1024xf32>
    %119 = arith.addf %113, %118 : vector<3x1024xf32>
    %c0_35 = arith.constant 0 : index
    %c12 = arith.constant 12 : index
    %120 = vector.load %arg6[%c0_35, %c12] : memref<3x24xf32, #tpu.memory_space<vmem>>, vector<3x1xf32>
    %121 = vector.extract_strided_slice %49 {offsets = [4, 0], sizes = [1, 1024], strides = [1, 1]} : vector<8x1024xf32> to vector<1x1024xf32>
    %122 = vector.broadcast %120 : vector<3x1xf32> to vector<3x1024xf32>
    %123 = vector.broadcast %121 : vector<1x1024xf32> to vector<3x1024xf32>
    %124 = arith.mulf %122, %123 : vector<3x1024xf32>
    %125 = arith.addf %119, %124 : vector<3x1024xf32>
    %c0_36 = arith.constant 0 : index
    %c13 = arith.constant 13 : index
    %126 = vector.load %arg6[%c0_36, %c13] : memref<3x24xf32, #tpu.memory_space<vmem>>, vector<3x1xf32>
    %127 = vector.extract_strided_slice %49 {offsets = [5, 0], sizes = [1, 1024], strides = [1, 1]} : vector<8x1024xf32> to vector<1x1024xf32>
    %128 = vector.broadcast %126 : vector<3x1xf32> to vector<3x1024xf32>
    %129 = vector.broadcast %127 : vector<1x1024xf32> to vector<3x1024xf32>
    %130 = arith.mulf %128, %129 : vector<3x1024xf32>
    %131 = arith.addf %125, %130 : vector<3x1024xf32>
    %c0_37 = arith.constant 0 : index
    %c14 = arith.constant 14 : index
    %132 = vector.load %arg6[%c0_37, %c14] : memref<3x24xf32, #tpu.memory_space<vmem>>, vector<3x1xf32>
    %133 = vector.extract_strided_slice %49 {offsets = [6, 0], sizes = [1, 1024], strides = [1, 1]} : vector<8x1024xf32> to vector<1x1024xf32>
    %134 = vector.broadcast %132 : vector<3x1xf32> to vector<3x1024xf32>
    %135 = vector.broadcast %133 : vector<1x1024xf32> to vector<3x1024xf32>
    %136 = arith.mulf %134, %135 : vector<3x1024xf32>
    %137 = arith.addf %131, %136 : vector<3x1024xf32>
    %c0_38 = arith.constant 0 : index
    %c15 = arith.constant 15 : index
    %138 = vector.load %arg6[%c0_38, %c15] : memref<3x24xf32, #tpu.memory_space<vmem>>, vector<3x1xf32>
    %139 = vector.extract_strided_slice %49 {offsets = [7, 0], sizes = [1, 1024], strides = [1, 1]} : vector<8x1024xf32> to vector<1x1024xf32>
    %140 = vector.broadcast %138 : vector<3x1xf32> to vector<3x1024xf32>
    %141 = vector.broadcast %139 : vector<1x1024xf32> to vector<3x1024xf32>
    %142 = arith.mulf %140, %141 : vector<3x1024xf32>
    %143 = arith.addf %137, %142 : vector<3x1024xf32>
    %c0_39 = arith.constant 0 : index
    %c16 = arith.constant 16 : index
    %144 = vector.load %arg6[%c0_39, %c16] : memref<3x24xf32, #tpu.memory_space<vmem>>, vector<3x1xf32>
    %145 = vector.extract_strided_slice %49 {offsets = [0, 0], sizes = [1, 1024], strides = [1, 1]} : vector<8x1024xf32> to vector<1x1024xf32>
    %146 = vector.broadcast %144 : vector<3x1xf32> to vector<3x1024xf32>
    %147 = vector.broadcast %145 : vector<1x1024xf32> to vector<3x1024xf32>
    %148 = arith.mulf %146, %147 : vector<3x1024xf32>
    %c0_40 = arith.constant 0 : index
    %c17 = arith.constant 17 : index
    %149 = vector.load %arg6[%c0_40, %c17] : memref<3x24xf32, #tpu.memory_space<vmem>>, vector<3x1xf32>
    %150 = vector.extract_strided_slice %49 {offsets = [1, 0], sizes = [1, 1024], strides = [1, 1]} : vector<8x1024xf32> to vector<1x1024xf32>
    %151 = vector.broadcast %149 : vector<3x1xf32> to vector<3x1024xf32>
    %152 = vector.broadcast %150 : vector<1x1024xf32> to vector<3x1024xf32>
    %153 = arith.mulf %151, %152 : vector<3x1024xf32>
    %154 = arith.addf %148, %153 : vector<3x1024xf32>
    %c0_41 = arith.constant 0 : index
    %c18 = arith.constant 18 : index
    %155 = vector.load %arg6[%c0_41, %c18] : memref<3x24xf32, #tpu.memory_space<vmem>>, vector<3x1xf32>
    %156 = vector.extract_strided_slice %49 {offsets = [2, 0], sizes = [1, 1024], strides = [1, 1]} : vector<8x1024xf32> to vector<1x1024xf32>
    %157 = vector.broadcast %155 : vector<3x1xf32> to vector<3x1024xf32>
    %158 = vector.broadcast %156 : vector<1x1024xf32> to vector<3x1024xf32>
    %159 = arith.mulf %157, %158 : vector<3x1024xf32>
    %160 = arith.addf %154, %159 : vector<3x1024xf32>
    %c0_42 = arith.constant 0 : index
    %c19 = arith.constant 19 : index
    %161 = vector.load %arg6[%c0_42, %c19] : memref<3x24xf32, #tpu.memory_space<vmem>>, vector<3x1xf32>
    %162 = vector.extract_strided_slice %49 {offsets = [3, 0], sizes = [1, 1024], strides = [1, 1]} : vector<8x1024xf32> to vector<1x1024xf32>
    %163 = vector.broadcast %161 : vector<3x1xf32> to vector<3x1024xf32>
    %164 = vector.broadcast %162 : vector<1x1024xf32> to vector<3x1024xf32>
    %165 = arith.mulf %163, %164 : vector<3x1024xf32>
    %166 = arith.addf %160, %165 : vector<3x1024xf32>
    %c0_43 = arith.constant 0 : index
    %c20 = arith.constant 20 : index
    %167 = vector.load %arg6[%c0_43, %c20] : memref<3x24xf32, #tpu.memory_space<vmem>>, vector<3x1xf32>
    %168 = vector.extract_strided_slice %49 {offsets = [4, 0], sizes = [1, 1024], strides = [1, 1]} : vector<8x1024xf32> to vector<1x1024xf32>
    %169 = vector.broadcast %167 : vector<3x1xf32> to vector<3x1024xf32>
    %170 = vector.broadcast %168 : vector<1x1024xf32> to vector<3x1024xf32>
    %171 = arith.mulf %169, %170 : vector<3x1024xf32>
    %172 = arith.addf %166, %171 : vector<3x1024xf32>
    %c0_44 = arith.constant 0 : index
    %c21 = arith.constant 21 : index
    %173 = vector.load %arg6[%c0_44, %c21] : memref<3x24xf32, #tpu.memory_space<vmem>>, vector<3x1xf32>
    %174 = vector.extract_strided_slice %49 {offsets = [5, 0], sizes = [1, 1024], strides = [1, 1]} : vector<8x1024xf32> to vector<1x1024xf32>
    %175 = vector.broadcast %173 : vector<3x1xf32> to vector<3x1024xf32>
    %176 = vector.broadcast %174 : vector<1x1024xf32> to vector<3x1024xf32>
    %177 = arith.mulf %175, %176 : vector<3x1024xf32>
    %178 = arith.addf %172, %177 : vector<3x1024xf32>
    %c0_45 = arith.constant 0 : index
    %c22 = arith.constant 22 : index
    %179 = vector.load %arg6[%c0_45, %c22] : memref<3x24xf32, #tpu.memory_space<vmem>>, vector<3x1xf32>
    %180 = vector.extract_strided_slice %49 {offsets = [6, 0], sizes = [1, 1024], strides = [1, 1]} : vector<8x1024xf32> to vector<1x1024xf32>
    %181 = vector.broadcast %179 : vector<3x1xf32> to vector<3x1024xf32>
    %182 = vector.broadcast %180 : vector<1x1024xf32> to vector<3x1024xf32>
    %183 = arith.mulf %181, %182 : vector<3x1024xf32>
    %184 = arith.addf %178, %183 : vector<3x1024xf32>
    %c0_46 = arith.constant 0 : index
    %c23 = arith.constant 23 : index
    %185 = vector.load %arg6[%c0_46, %c23] : memref<3x24xf32, #tpu.memory_space<vmem>>, vector<3x1xf32>
    %186 = vector.extract_strided_slice %49 {offsets = [7, 0], sizes = [1, 1024], strides = [1, 1]} : vector<8x1024xf32> to vector<1x1024xf32>
    %187 = vector.broadcast %185 : vector<3x1xf32> to vector<3x1024xf32>
    %188 = vector.broadcast %186 : vector<1x1024xf32> to vector<3x1024xf32>
    %189 = arith.mulf %187, %188 : vector<3x1024xf32>
    %190 = arith.addf %184, %189 : vector<3x1024xf32>
    %191 = arith.subf %96, %143 : vector<3x1024xf32>
    %192 = arith.subf %191, %190 : vector<3x1024xf32>
    %c0_47 = arith.constant 0 : index
    %c0_48 = arith.constant 0 : index
    %193 = vector.load %arg7[%c0_47, %c0_48] : memref<3x1xf32, #tpu.memory_space<vmem>>, vector<3x1xf32>
    %194 = vector.extract_strided_slice %192 {offsets = [0, 0], sizes = [3, 128], strides = [1, 1]} : vector<3x1024xf32> to vector<3x128xf32>
    %195 = vector.extract_strided_slice %143 {offsets = [0, 256], sizes = [3, 128], strides = [1, 1]} : vector<3x1024xf32> to vector<3x128xf32>
    %196 = arith.addf %194, %195 : vector<3x128xf32>
    %197 = vector.extract_strided_slice %190 {offsets = [0, 128], sizes = [3, 128], strides = [1, 1]} : vector<3x1024xf32> to vector<3x128xf32>
    %198 = arith.addf %196, %197 : vector<3x128xf32>
    %199 = vector.broadcast %193 : vector<3x1xf32> to vector<3x128xf32>
    %200 = arith.addf %198, %199 : vector<3x128xf32>
    %c0_49 = arith.constant 0 : index
    %c0_50 = arith.constant 0 : index
    %201 = vector.load %arg8[%c0_49, %c0_50] : memref<3x1024xf32, #tpu.memory_space<vmem>>, vector<3x128xf32>
    tpu.vector_store %arg8[%c0_49, %c0_50], %200 {strides = array<i32>} : memref<3x1024xf32, #tpu.memory_space<vmem>>, vector<3x128xf32>,
    %202 = vector.extract_strided_slice %192 {offsets = [0, 128], sizes = [3, 128], strides = [1, 1]} : vector<3x1024xf32> to vector<3x128xf32>
    %203 = vector.extract_strided_slice %143 {offsets = [0, 384], sizes = [3, 128], strides = [1, 1]} : vector<3x1024xf32> to vector<3x128xf32>
    %204 = arith.addf %202, %203 : vector<3x128xf32>
    %205 = vector.extract_strided_slice %190 {offsets = [0, 0], sizes = [3, 128], strides = [1, 1]} : vector<3x1024xf32> to vector<3x128xf32>
    %206 = arith.addf %204, %205 : vector<3x128xf32>
    %207 = vector.broadcast %193 : vector<3x1xf32> to vector<3x128xf32>
    %208 = arith.addf %206, %207 : vector<3x128xf32>
    %c0_51 = arith.constant 0 : index
    %c128 = arith.constant 128 : index
    %209 = vector.load %arg8[%c0_51, %c128] : memref<3x1024xf32, #tpu.memory_space<vmem>>, vector<3x128xf32>
    tpu.vector_store %arg8[%c0_51, %c128], %208 {strides = array<i32>} : memref<3x1024xf32, #tpu.memory_space<vmem>>, vector<3x128xf32>,
    %210 = vector.extract_strided_slice %192 {offsets = [0, 256], sizes = [3, 128], strides = [1, 1]} : vector<3x1024xf32> to vector<3x128xf32>
    %211 = vector.extract_strided_slice %143 {offsets = [0, 0], sizes = [3, 128], strides = [1, 1]} : vector<3x1024xf32> to vector<3x128xf32>
    %212 = arith.addf %210, %211 : vector<3x128xf32>
    %213 = vector.extract_strided_slice %190 {offsets = [0, 384], sizes = [3, 128], strides = [1, 1]} : vector<3x1024xf32> to vector<3x128xf32>
    %214 = arith.addf %212, %213 : vector<3x128xf32>
    %215 = vector.broadcast %193 : vector<3x1xf32> to vector<3x128xf32>
    %216 = arith.addf %214, %215 : vector<3x128xf32>
    %c0_52 = arith.constant 0 : index
    %c256 = arith.constant 256 : index
    %217 = vector.load %arg8[%c0_52, %c256] : memref<3x1024xf32, #tpu.memory_space<vmem>>, vector<3x128xf32>
    tpu.vector_store %arg8[%c0_52, %c256], %216 {strides = array<i32>} : memref<3x1024xf32, #tpu.memory_space<vmem>>, vector<3x128xf32>,
    %218 = vector.extract_strided_slice %192 {offsets = [0, 384], sizes = [3, 128], strides = [1, 1]} : vector<3x1024xf32> to vector<3x128xf32>
    %219 = vector.extract_strided_slice %143 {offsets = [0, 128], sizes = [3, 128], strides = [1, 1]} : vector<3x1024xf32> to vector<3x128xf32>
    %220 = arith.addf %218, %219 : vector<3x128xf32>
    %221 = vector.extract_strided_slice %190 {offsets = [0, 256], sizes = [3, 128], strides = [1, 1]} : vector<3x1024xf32> to vector<3x128xf32>
    %222 = arith.addf %220, %221 : vector<3x128xf32>
    %223 = vector.broadcast %193 : vector<3x1xf32> to vector<3x128xf32>
    %224 = arith.addf %222, %223 : vector<3x128xf32>
    %c0_53 = arith.constant 0 : index
    %c384 = arith.constant 384 : index
    %225 = vector.load %arg8[%c0_53, %c384] : memref<3x1024xf32, #tpu.memory_space<vmem>>, vector<3x128xf32>
    tpu.vector_store %arg8[%c0_53, %c384], %224 {strides = array<i32>} : memref<3x1024xf32, #tpu.memory_space<vmem>>, vector<3x128xf32>,
    %226 = vector.extract_strided_slice %192 {offsets = [0, 512], sizes = [3, 128], strides = [1, 1]} : vector<3x1024xf32> to vector<3x128xf32>
    %227 = vector.extract_strided_slice %143 {offsets = [0, 768], sizes = [3, 128], strides = [1, 1]} : vector<3x1024xf32> to vector<3x128xf32>
    %228 = arith.addf %226, %227 : vector<3x128xf32>
    %229 = vector.extract_strided_slice %190 {offsets = [0, 640], sizes = [3, 128], strides = [1, 1]} : vector<3x1024xf32> to vector<3x128xf32>
    %230 = arith.addf %228, %229 : vector<3x128xf32>
    %231 = vector.broadcast %193 : vector<3x1xf32> to vector<3x128xf32>
    %232 = arith.addf %230, %231 : vector<3x128xf32>
    %c0_54 = arith.constant 0 : index
    %c512 = arith.constant 512 : index
    %233 = vector.load %arg8[%c0_54, %c512] : memref<3x1024xf32, #tpu.memory_space<vmem>>, vector<3x128xf32>
    tpu.vector_store %arg8[%c0_54, %c512], %232 {strides = array<i32>} : memref<3x1024xf32, #tpu.memory_space<vmem>>, vector<3x128xf32>,
    %234 = vector.extract_strided_slice %192 {offsets = [0, 640], sizes = [3, 128], strides = [1, 1]} : vector<3x1024xf32> to vector<3x128xf32>
    %235 = vector.extract_strided_slice %143 {offsets = [0, 896], sizes = [3, 128], strides = [1, 1]} : vector<3x1024xf32> to vector<3x128xf32>
    %236 = arith.addf %234, %235 : vector<3x128xf32>
    %237 = vector.extract_strided_slice %190 {offsets = [0, 512], sizes = [3, 128], strides = [1, 1]} : vector<3x1024xf32> to vector<3x128xf32>
    %238 = arith.addf %236, %237 : vector<3x128xf32>
    %239 = vector.broadcast %193 : vector<3x1xf32> to vector<3x128xf32>
    %240 = arith.addf %238, %239 : vector<3x128xf32>
    %c0_55 = arith.constant 0 : index
    %c640 = arith.constant 640 : index
    %241 = vector.load %arg8[%c0_55, %c640] : memref<3x1024xf32, #tpu.memory_space<vmem>>, vector<3x128xf32>
    tpu.vector_store %arg8[%c0_55, %c640], %240 {strides = array<i32>} : memref<3x1024xf32, #tpu.memory_space<vmem>>, vector<3x128xf32>,
    %242 = vector.extract_strided_slice %192 {offsets = [0, 768], sizes = [3, 128], strides = [1, 1]} : vector<3x1024xf32> to vector<3x128xf32>
    %243 = vector.extract_strided_slice %143 {offsets = [0, 512], sizes = [3, 128], strides = [1, 1]} : vector<3x1024xf32> to vector<3x128xf32>
    %244 = arith.addf %242, %243 : vector<3x128xf32>
    %245 = vector.extract_strided_slice %190 {offsets = [0, 896], sizes = [3, 128], strides = [1, 1]} : vector<3x1024xf32> to vector<3x128xf32>
    %246 = arith.addf %244, %245 : vector<3x128xf32>
    %247 = vector.broadcast %193 : vector<3x1xf32> to vector<3x128xf32>
    %248 = arith.addf %246, %247 : vector<3x128xf32>
    %c0_56 = arith.constant 0 : index
    %c768 = arith.constant 768 : index
    %249 = vector.load %arg8[%c0_56, %c768] : memref<3x1024xf32, #tpu.memory_space<vmem>>, vector<3x128xf32>
    tpu.vector_store %arg8[%c0_56, %c768], %248 {strides = array<i32>} : memref<3x1024xf32, #tpu.memory_space<vmem>>, vector<3x128xf32>,
    %250 = vector.extract_strided_slice %192 {offsets = [0, 896], sizes = [3, 128], strides = [1, 1]} : vector<3x1024xf32> to vector<3x128xf32>
    %251 = vector.extract_strided_slice %143 {offsets = [0, 640], sizes = [3, 128], strides = [1, 1]} : vector<3x1024xf32> to vector<3x128xf32>
    %252 = arith.addf %250, %251 : vector<3x128xf32>
    %253 = vector.extract_strided_slice %190 {offsets = [0, 768], sizes = [3, 128], strides = [1, 1]} : vector<3x1024xf32> to vector<3x128xf32>
    %254 = arith.addf %252, %253 : vector<3x128xf32>
    %255 = vector.broadcast %193 : vector<3x1xf32> to vector<3x128xf32>
    %256 = arith.addf %254, %255 : vector<3x128xf32>
    %c0_57 = arith.constant 0 : index
    %c896 = arith.constant 896 : index
    %257 = vector.load %arg8[%c0_57, %c896] : memref<3x1024xf32, #tpu.memory_space<vmem>>, vector<3x128xf32>
    tpu.vector_store %arg8[%c0_57, %c896], %256 {strides = array<i32>} : memref<3x1024xf32, #tpu.memory_space<vmem>>, vector<3x128xf32>,
    return
  }
  func.func @transform_0(%arg0: i32) -> (i32, i32) {
    %c0_i32 = arith.constant 0 : i32
    %c0_i32_0 = arith.constant 0 : i32
    %c0_i32_1 = arith.constant 0 : i32
    return %c0_i32, %c0_i32_0 : i32, i32
  }
  func.func @transform_1(%arg0: i32) -> (i32, i32) {
    %c0_i32 = arith.constant 0 : i32
    %c0_i32_0 = arith.constant 0 : i32
    %c0_i32_1 = arith.constant 0 : i32
    return %c0_i32, %c0_i32_0 : i32, i32
  }
  func.func @transform_2(%arg0: i32) -> (i32, i32) {
    %c0_i32 = arith.constant 0 : i32
    %c0_i32_0 = arith.constant 0 : i32
    %c0_i32_1 = arith.constant 0 : i32
    return %c0_i32, %c0_i32_0 : i32, i32
  }
  func.func @transform_3(%arg0: i32) -> i32 {
    %c0_i32 = arith.constant 0 : i32
    %c0_i32_0 = arith.constant 0 : i32
    return %c0_i32 : i32
  }
  func.func @transform_4(%arg0: i32) -> i32 {
    %c0_i32 = arith.constant 0 : i32
    %c0_i32_0 = arith.constant 0 : i32
    return %c0_i32 : i32
  }
  func.func @transform_5(%arg0: i32) -> (i32, i32) {
    %c0_i32 = arith.constant 0 : i32
    %c0_i32_0 = arith.constant 0 : i32
    %c0_i32_1 = arith.constant 0 : i32
    return %c0_i32, %c0_i32_0 : i32, i32
  }
  func.func @transform_6(%arg0: i32) -> (i32, i32) {
    %c0_i32 = arith.constant 0 : i32
    %c0_i32_0 = arith.constant 0 : i32
    %c0_i32_1 = arith.constant 0 : i32
    return %c0_i32, %c0_i32_0 : i32, i32
  }
  func.func @transform_7(%arg0: i32) -> (i32, i32) {
    %c0_i32 = arith.constant 0 : i32
    %c0_i32_0 = arith.constant 0 : i32
    %c0_i32_1 = arith.constant 0 : i32
    return %c0_i32, %c0_i32_0 : i32, i32
  }
}

</mosaic_0001>

<bundles_post_ra>
// kernel: forward.1
= control target key start
LH: loop header
LB: loop body
LE: loop exit
PB: predicated region body
PF: predicated region fallthrough
CT: control target
= control target key end

     0   :  { %13 = vsyncpa [#allocation4], 0  ;;  %s1396_s27 = smov [#allocation3]   ;;  %s3063_s0 = inlined_call_operand.vmem [shape: f32[4,4096], index: 0, kind: input, shape index: {}]   ;;  %s3064_s1 = inlined_call_operand.vmem [shape: f32[8,4], index: 1, kind: input, shape index: {}]   ;;  %s3065_s2 = inlined_call_operand.vmem [shape: f32[8,1], index: 2, kind: input, shape index: {}]   ;;  %s3066_s3 = inlined_call_operand.vmem [shape: f32[4], index: 3, kind: input, shape index: {}]   ;;  %s3067_s4 = inlined_call_operand.<no memory space> [shape: f32[1], index: 4, kind: input, shape index: {}]   ;;  %s3068_s5 = inlined_call_operand.vmem [shape: f32[3,24], index: 5, kind: input, shape index: {}]   ;;  %s3069_s6 = inlined_call_operand.vmem [shape: f32[3,1], index: 6, kind: input, shape index: {}]   ;;  %s3070_s7 = inlined_call_operand.vmem [shape: f32[3,1024], index: 7, kind: output, shape index: {}]  }
   0x1   :  { %s25_s26 = sshll.u32 %s3066_s3, 4  ;;  %s26_s26 = int_to_ptr.vmem [resolvable:$true] %s25_s26 }
   0x2   :  { %28 = dma.vmem_to_smem %s26_s26, 16, %s1396_s27, [#allocation4]  }
   0x3   :  { %1394 = dma.done.wait [#allocation4], 16  }
   0x4   :  { %1395 = vsyncadd [#allocation4], 4294967280 }
   0x5   :  { %39 = sfence }
   0x6   :  { %v41_v0 = vld [vmem:[%s3064_s1] sm:$0xff]  ;;  %v1397_v1 = vmov 3   ;;  %v1398_v2 = vmov 1   ;;  %v1399_v3 = vmov 0   ;;  %v1400_v6 = vmov 2   ;;  %s1674_s13 = sld [smem:[#allocation3]] }
   0x7   :  { %1356 = vset.pattern.permute.xlu2 %v1397_v1  ;;  %1354 = vset.pattern.permute.xlu1 %v1398_v2  ;;  %v40_v4 = vld [vmem:[%s3065_s2] sm:$0xff]  ;;  %v1401_v7 = vmov 4   ;;  %v1402_v8 = vmov 6   ;;  %v1403_v9 = vmov 5   ;;  %v1404_v10 = vmov 7   ;;  %s1676_s14 = sld [smem:[#allocation3 + $0x1]] }
   0x8   :  { %1353 = vset.pattern.permute.xlu0 %v1399_v3  ;;  %488 = vperm.xlu2 %1356, %v41_v0   ;;  %v1474_v5 = vld [vmem:[%s3068_s5] sm:$0x7]  ;;  %v1405_v11 = vmov 11   ;;  %v1406_v12 = vmov 8   ;;  %v1407_v13 = vmov 9   ;;  %v1408_v14 = vmov 17  }
   0x9   :  { %200 = vperm.xlu1 %1354, %v41_v0   ;;  %51 = vperm.xlu0 %1353, %v41_v0   ;;  %v1409_v15 = vmov 10   ;;  %v1410_v16 = vmov 12   ;;  %v1411_v17 = vmov 15   ;;  %v1412_v18 = vmov 13   ;;  %v1503_v25 = vld [vmem:[%s3063_s0 + $0x1] ss:$4 sm:$0xff] }
   0xa   :  { %v1413_v19 = vmov 14   ;;  %v1414_v20 = vmov 16   ;;  %v1415_v21 = vmov 18   ;;  %v1416_v22 = vmov 19   ;;  %v1508_v26 = vld [vmem:[%s3063_s0 + $0x21] ss:$4 sm:$0xff] }
   0xb   :  { %v1417_v23 = vmov 20   ;;  %v1418_v24 = vmov 21   ;;  %v1515_v29 = vld [vmem:[%s3063_s0 + $0x41] ss:$4 sm:$0xff]  ;;  %v1536_v46 = vld [vmem:[%s3063_s0] ss:$4 sm:$0xff] }
   0xc   :  { %v1541_v47 = vld [vmem:[%s3063_s0 + $0x20] ss:$4 sm:$0xff]  ;;  %v1419_v50 = vmov 22   ;;  %v58_v51 = vperm.slane %v1536_v46, 0  ;;  %v59_v52 = vperm.slane %v1536_v46, 1  ;;  %v60_v53 = vperm.slane %v1536_v46, 2 }
   0xd   :  { %v61_v54 = vperm.slane %v1536_v46, 3  ;;  %v1420_v55 = vmov 23   ;;  %v1553_v56 = vld [vmem:[%s3063_s0 + $0x40] ss:$4 sm:$0xff]  ;;  %v62_v57 = vperm.slane %v1536_v46, 4  ;;  %v63_v58 = vperm.slane %v1536_v46, 5 }
   0xe   :  { %v64_v59 = vperm.slane %v1536_v46, 6  ;;  %v1604_v45 = vld [vmem:[%s3063_s0 + $0x2] ss:$4 sm:$0xff]  ;;  %v1321_v44 = vld [vmem:[%s3063_s0 + $0x3] ss:$4 sm:$0xff]  ;;  %s1688_s15 = sld [smem:[#allocation3 + $0x3]] }
   0xf   :  { %3168 = vst [vmem:[#allocation6_spill] sm:$0xff] %v1604_v45  ;;  %v1627_v48 = vld [vmem:[%s3063_s0 + $0x42] ss:$4 sm:$0xff]  ;;  %v1322_v49 = vld [vmem:[%s3063_s0 + $0x23] ss:$4 sm:$0xff]  ;;  %v495_v37 = vperm.slane %v1321_v44, 0 }
  0x10   :  { %1357 = vset.pattern.permute.xlu2 %v1399_v3  ;;  %3170 = vst [vmem:[#allocation8_spill] sm:$0xff] %v1627_v48  ;;  %v1640_v40 = vld [vmem:[%s3063_s0 + $0x62] ss:$4 sm:$0xff]  ;;  %v496_v43 = vperm.slane %v1321_v44, 1  ;;  %v497_v36 = vperm.slane %v1321_v44, 2  ;;  %v498_v42 = vperm.slane %v1321_v44, 3 }
  0x11   :  { %1355 = vset.pattern.permute.xlu1 %v1400_v6  ;;  %156 = vperm.xlu0 %1353, %v40_v4   ;;  %3171 = vst [vmem:[#allocation9_spill] sm:$0xff] %v1640_v40  ;;  %v500_v39 = vperm.slane %v1321_v44, 5  ;;  %v501_v35 = vperm.slane %v1321_v44, 6  ;;  %v502_v38 = vperm.slane %v1321_v44, 7  ;;  %v503_v34 = vperm.slane %v1322_v49, 0 }
  0x12   :  { %732 = vperm.xlu2 %1357, %v1474_v5   ;;  %344 = vperm.xlu1 %1355, %v41_v0   ;;  %v504_v41 = vperm.slane %v1322_v49, 1  ;;  %v505_v33 = vperm.slane %v1322_v49, 2  ;;  %v1324_v32 = vld [vmem:[%s3063_s0 + $0x63] ss:$4 sm:$0xff]  ;;  %v507_v31 = vperm.slane %v1322_v49, 4  ;;  %v508_v30 = vperm.slane %v1322_v49, 5 }
  0x13   :  { %v509_v28 = vperm.slane %v1322_v49, 6  ;;  %v510_v27 = vperm.slane %v1322_v49, 7 }
  0x19   :  { %1358 = vset.pattern.permute.xlu0 %v1398_v2 }
  0x1a   :  { %1359 = vset.pattern.permute.xlu2 %v1397_v1  ;;  %780 = vperm.xlu1 %1355, %v1474_v5   ;;  %v1567_v1 = vld [vmem:[%s3063_s0 + $0x60] ss:$4 sm:$0xff] }
  0x1b   :  { %752 = vperm.xlu0 %1358, %v1474_v5   ;;  %808 = vperm.xlu2 %1359, %v1474_v5  }
  0x22   :  { %1360 = vset.pattern.permute.xlu1 %v1401_v7 }
  0x23   :  { %1362 = vset.pattern.permute.xlu0 %v1402_v8  ;;  %1361 = vset.pattern.permute.xlu2 %v1403_v9  ;;  %v524_v9 = vperm.slane %v1324_v32, 5  ;;  %v526_v8 = vperm.slane %v1324_v32, 7 }
  0x24   :  { %836 = vperm.xlu1 %1360, %v1474_v5   ;;  %892 = vperm.xlu0 %1362, %v1474_v5  }
  0x25   :  { %864 = vperm.xlu2 %1361, %v1474_v5  }
  0x2c   :  { %1363 = vset.pattern.permute.xlu1 %v1404_v10  ;;  %1367 = vset.pattern.permute.xlu0 %v1405_v11  ;;  %v523_v10 = vperm.slane %v1324_v32, 4 }
  0x2d   :  { %1364 = vset.pattern.permute.xlu2 %v1406_v12  ;;  %920 = vperm.xlu1 %1363, %v1474_v5   ;;  %v522_v12 = vperm.slane %v1324_v32, 3 }
  0x2e   :  { %1000 = vperm.xlu0 %1367, %v1474_v5   ;;  %948 = vperm.xlu2 %1364, %v1474_v5  }
  0x35   :  { %1365 = vset.pattern.permute.xlu1 %v1407_v13  ;;  %v521_v13 = vperm.slane %v1324_v32, 2 }
  0x36   :  { %1372 = vset.pattern.permute.xlu0 %v1408_v14  ;;  %1366 = vset.pattern.permute.xlu2 %v1409_v15  ;;  %v519_v15 = vperm.slane %v1324_v32, 0  ;;  %v520_v14 = vperm.slane %v1324_v32, 1 }
  0x37   :  { %960 = vperm.xlu1 %1365, %v1474_v5   ;;  %1112 = vperm.xlu0 %1372, %v1474_v5  }
  0x38   :  { %980 = vperm.xlu2 %1366, %v1474_v5  }
  0x3f   :  { %1368 = vset.pattern.permute.xlu1 %v1410_v16  ;;  %1377 = vset.pattern.permute.xlu0 %v1411_v17 }
  0x40   :  { %1369 = vset.pattern.permute.xlu2 %v1412_v18  ;;  %1020 = vperm.xlu1 %1368, %v1474_v5  }
  0x41   :  { %1080 = vperm.xlu0 %1377, %v1474_v5   ;;  %1040 = vperm.xlu2 %1369, %v1474_v5  }
  0x48   :  { %1370 = vset.pattern.permute.xlu1 %v1413_v19  ;;  %v1588_v19 = vld [vmem:[%s3063_s0 + $0x61] ss:$4 sm:$0xff] }
  0x49   :  { %1371 = vset.pattern.permute.xlu2 %v1414_v20  ;;  %1060 = vperm.xlu1 %1370, %v1474_v5   ;;  %v1267_v20 = vld [vmem:[%s3069_s6] sm:$0x7] }
  0x4a   :  { %1100 = vperm.xlu2 %1371, %v1474_v5   ;;  %1381 = vset.pattern.permute.xlu0 %v1399_v3 }
  0x51   :  { %1373 = vset.pattern.permute.xlu1 %v1415_v21 }
  0x52   :  { %1374 = vset.pattern.permute.xlu2 %v1416_v22  ;;  %1132 = vperm.xlu1 %1373, %v1474_v5  }
  0x53   :  { %1152 = vperm.xlu2 %1374, %v1474_v5  }
  0x5a   :  { %1375 = vset.pattern.permute.xlu1 %v1417_v23 }
  0x5b   :  { %1376 = vset.pattern.permute.xlu2 %v1418_v24  ;;  %1172 = vperm.xlu1 %1375, %v1474_v5  }
  0x5c   :  { %1192 = vperm.xlu2 %1376, %v1474_v5  }
  0x62   :  { %v489_v11 = vpop.permute.xlu2 %488 }
  0x63   :  { %1378 = vset.pattern.permute.xlu1 %v1419_v50  ;;  %v499_v50 = vperm.slane %v1321_v44, 4  ;;  %v1680_v7 = vmul.f32 %v495_v37, %v489_v11  ;;  %v1686_v6 = vmul.f32 %v498_v42, %v489_v11  ;;  %v1692_v2 = vmul.f32 %v500_v39, %v489_v11 }
  0x64   :  { %1379 = vset.pattern.permute.xlu2 %v1420_v55  ;;  %1212 = vperm.xlu1 %1378, %v1474_v5   ;;  %v506_v55 = vperm.slane %v1322_v49, 3  ;;  %v525_v49 = vperm.slane %v1324_v32, 6  ;;  %v1694_v0 = vmul.f32 %v501_v35, %v489_v11  ;;  %v1696_v63 = vmul.f32 %v502_v38, %v489_v11 }
  0x65   :  { %1232 = vperm.xlu2 %1379, %v1474_v5   ;;  %3172 = vst [vmem:[#allocation10_spill] sm:$0xff] %v1680_v7  ;;  %v1682_v5 = vmul.f32 %v496_v43, %v489_v11  ;;  %v1690_v4 = vmul.f32 %v499_v50, %v489_v11  ;;  %v1698_v32 = vmul.f32 %v503_v34, %v489_v11 }
  0x66   :  { %3175 = vst [vmem:[#allocation13_spill] sm:$0xff] %v1686_v6  ;;  %v1700_v37 = vmul.f32 %v504_v41, %v489_v11  ;;  %v1702_v43 = vmul.f32 %v505_v33, %v489_v11  ;;  %v1706_v42 = vmul.f32 %v507_v31, %v489_v11  ;;  %v1708_v62 = vmul.f32 %v508_v30, %v489_v11 }
  0x67   :  { %3173 = vst [vmem:[#allocation11_spill] sm:$0xff] %v1682_v5  ;;  %v1710_v50 = vmul.f32 %v509_v28, %v489_v11  ;;  %v1712_v39 = vmul.f32 %v510_v27, %v489_v11  ;;  %v1730_v41 = vmul.f32 %v519_v15, %v489_v11 }
  0x68   :  { %3176 = vst [vmem:[#allocation14_spill] sm:$0xff] %v1690_v4 }
  0x69   :  { %3177 = vst [vmem:[#allocation15_spill] sm:$0xff] %v1692_v2 }
  0x6a   :  { %3178 = vst [vmem:[#allocation16_spill] sm:$0xff] %v1694_v0 }
  0x6b   :  { %3179 = vst [vmem:[#allocation17_spill] sm:$0xff] %v1696_v63 }
  0x6c   :  { %1380 = vset.pattern.permute.xlu1 %v1399_v3  ;;  %v1618_v3 = vld [vmem:[%s3063_s0 + $0x22] ss:$4 sm:$0xff]  ;;  %3180 = vst [vmem:[#allocation18_spill] sm:$0xff] %v1698_v32 }
  0x6d   :  { %1272 = vperm.xlu1 %1380, %v1267_v20   ;;  %3169 = vst [vmem:[#allocation7_spill] sm:$0xff] %v1618_v3  ;;  %v1323_v20 = vld [vmem:[%s3063_s0 + $0x43] ss:$4 sm:$0xff]  ;;  %s1678_s0 = sld [smem:[#allocation3 + $0x2]] }
  0x6e   :  { %v511_v24 = vperm.slane %v1323_v20, 0  ;;  %v512_v23 = vperm.slane %v1323_v20, 1  ;;  %v513_v22 = vperm.slane %v1323_v20, 2  ;;  %v514_v21 = vperm.slane %v1323_v20, 3  ;;  %3181 = vst [vmem:[#allocation19_spill] sm:$0xff] %v1700_v37 }
  0x6f   :  { %v515_v18 = vperm.slane %v1323_v20, 4  ;;  %v516_v17 = vperm.slane %v1323_v20, 5  ;;  %v517_v16 = vperm.slane %v1323_v20, 6  ;;  %v518_v44 = vperm.slane %v1323_v20, 7  ;;  %3182 = vst [vmem:[#allocation20_spill] sm:$0xff] %v1702_v43 }
  0x70   :  { %v1684_v20 = vmul.f32 %v497_v36, %v489_v11  ;;  %v1704_v36 = vmul.f32 %v506_v55, %v489_v11  ;;  %3184 = vst [vmem:[#allocation22_spill] sm:$0xff] %v1706_v42  ;;  %v1714_v61 = vmul.f32 %v511_v24, %v489_v11  ;;  %v1716_v34 = vmul.f32 %v512_v23, %v489_v11 }
  0x71   :  { %3185 = vst [vmem:[#allocation23_spill] sm:$0xff] %v1708_v62  ;;  %v1718_v38 = vmul.f32 %v513_v22, %v489_v11  ;;  %v1720_v33 = vmul.f32 %v514_v21, %v489_v11  ;;  %v1722_v31 = vmul.f32 %v515_v18, %v489_v11  ;;  %v1724_v30 = vmul.f32 %v516_v17, %v489_v11 }
  0x72   :  { %3174 = vst [vmem:[#allocation12_spill] sm:$0xff] %v1684_v20  ;;  %v1726_v28 = vmul.f32 %v517_v16, %v489_v11  ;;  %v1728_v27 = vmul.f32 %v518_v44, %v489_v11  ;;  %v1732_v24 = vmul.f32 %v520_v14, %v489_v11  ;;  %v1734_v23 = vmul.f32 %v521_v13, %v489_v11 }
  0x73   :  { %3183 = vst [vmem:[#allocation21_spill] sm:$0xff] %v1704_v36  ;;  %v1736_v22 = vmul.f32 %v522_v12, %v489_v11  ;;  %v1738_v55 = vmul.f32 %v523_v10, %v489_v11  ;;  %v1740_v21 = vmul.f32 %v524_v9, %v489_v11  ;;  %v1742_v18 = vmul.f32 %v525_v49, %v489_v11 }
  0x74   :  { %3186 = vst [vmem:[#allocation24_spill] sm:$0xff] %v1710_v50  ;;  %v1744_v17 = vmul.f32 %v526_v8, %v489_v11  ;;  %v1747_v16 = vstv %s1674_s13  ;;  %v1750_v44 = vstv %s1676_s14  ;;  %v1753_v15 = vstv %s1678_s0 }
  0x75   :  { %3187 = vst [vmem:[#allocation25_spill] sm:$0xff] %v1712_v39  ;;  %v1756_v14 = vstv %s1688_s15  ;;  %v1761_v12 = vstv %s3067_s4 }
  0x76   :  { %3188 = vst [vmem:[#allocation26_spill] sm:$0xff] %v1714_v61 }
  0x77   :  { %3189 = vst [vmem:[#allocation27_spill] sm:$0xff] %v1716_v34 }
  0x78   :  { %3190 = vst [vmem:[#allocation28_spill] sm:$0xff] %v1718_v38 }
  0x79   :  { %3191 = vst [vmem:[#allocation29_spill] sm:$0xff] %v1720_v33 }
  0x7a   :  { %3192 = vst [vmem:[#allocation30_spill] sm:$0xff] %v1722_v31 }
  0x7b   :  { %v52_v35 = vpop.permute.xlu0 %51  ;;  %3193 = vst [vmem:[#allocation31_spill] sm:$0xff] %v1724_v30 }
  0x7c   :  { %3194 = vst [vmem:[#allocation32_spill] sm:$0xff] %v1726_v28  ;;  %v122_v9 = vmul.f32 %v58_v51, %v52_v35  ;;  %v123_v8 = vmul.f32 %v59_v52, %v52_v35  ;;  %v124_v10 = vmul.f32 %v60_v53, %v52_v35  ;;  %v125_v11 = vmul.f32 %v61_v54, %v52_v35 }
  0x7d   :  { %3195 = vst [vmem:[#allocation33_spill] sm:$0xff] %v1728_v27  ;;  %v126_v13 = vmul.f32 %v62_v57, %v52_v35  ;;  %v127_v49 = vmul.f32 %v63_v58, %v52_v35  ;;  %v128_v60 = vmul.f32 %v64_v59, %v52_v35  ;;  %v3209_v51 = vperm.slane %v1536_v46, 7 }
  0x7e   :  { %3196 = vst [vmem:[#allocation34_spill] sm:$0xff] %v1730_v41  ;;  %v3210_v52 = vperm.slane %v1541_v47, 0  ;;  %v3211_v53 = vperm.slane %v1541_v47, 1  ;;  %v3212_v54 = vperm.slane %v1541_v47, 2  ;;  %v3213_v57 = vperm.slane %v1541_v47, 3 }
  0x7f   :  { %3197 = vst [vmem:[#allocation35_spill] sm:$0xff] %v1732_v24  ;;  %v3214_v58 = vperm.slane %v1541_v47, 4  ;;  %v3215_v59 = vperm.slane %v1541_v47, 5  ;;  %v3216_v46 = vperm.slane %v1541_v47, 6 }
  0x80   :  { %3198 = vst [vmem:[#allocation36_spill] sm:$0xff] %v1734_v23 }
  0x81   :  { %3199 = vst [vmem:[#allocation37_spill] sm:$0xff] %v1736_v22 }
  0x82   :  { %3200 = vst [vmem:[#allocation38_spill] sm:$0xff] %v1738_v55 }
  0x83   :  { %3201 = vst [vmem:[#allocation39_spill] sm:$0xff] %v1740_v21  ;;  %v157_v24 = vpop.permute.xlu0 %156 }
  0x84   :  { %3202 = vst [vmem:[#allocation40_spill] sm:$0xff] %v1742_v18  ;;  %v135_v18 = vmul.f32 %v3215_v59, %v52_v35  ;;  %v3222_v59 = vperm.slane %v1553_v56, 4  ;;  %v1827_v62 = vadd.f32 %v157_v24, %v122_v9  ;;  %v1833_v42 = vadd.f32 %v157_v24, %v125_v11 }
  0x85   :  { %3203 = vst [vmem:[#allocation41_spill] sm:$0xff] %v1744_v17  ;;  %v134_v17 = vmul.f32 %v3214_v58, %v52_v35  ;;  %v3221_v58 = vperm.slane %v1553_v56, 3  ;;  %v1839_v36 = vadd.f32 %v157_v24, %v128_v60 }
  0x86   :  { %3204 = vst [vmem:[#allocation42_spill] sm:$0xff] %v1747_v16  ;;  %v133_v16 = vmul.f32 %v3213_v57, %v52_v35  ;;  %v3220_v57 = vperm.slane %v1553_v56, 2  ;;  %v142_v27 = vmul.f32 %v3222_v59, %v52_v35  ;;  %v3229_v59 = vperm.slane %v1567_v1, 3 }
  0x87   :  { %3205 = vst [vmem:[#allocation43_spill] sm:$0xff] %v1750_v44  ;;  %v132_v44 = vmul.f32 %v3212_v54, %v52_v35  ;;  %v3219_v54 = vperm.slane %v1553_v56, 1  ;;  %v141_v41 = vmul.f32 %v3221_v58, %v52_v35  ;;  %v3228_v58 = vperm.slane %v1567_v1, 2 }
  0x88   :  { %3206 = vst [vmem:[#allocation44_spill] sm:$0xff] %v1753_v15  ;;  %v131_v15 = vmul.f32 %v3211_v53, %v52_v35  ;;  %v3218_v53 = vperm.slane %v1553_v56, 0  ;;  %v140_v23 = vmul.f32 %v3220_v57, %v52_v35  ;;  %v3227_v57 = vperm.slane %v1567_v1, 1 }
  0x89   :  { %3207 = vst [vmem:[#allocation45_spill] sm:$0xff] %v1756_v14  ;;  %v130_v14 = vmul.f32 %v3210_v52, %v52_v35  ;;  %v3217_v52 = vperm.slane %v1541_v47, 7  ;;  %v139_v22 = vmul.f32 %v3219_v54, %v52_v35  ;;  %v3226_v54 = vperm.slane %v1567_v1, 0 }
  0x8a   :  { %3208 = vst [vmem:[#allocation46_spill] sm:$0xff] %v1761_v12  ;;  %v129_v12 = vmul.f32 %v3209_v51, %v52_v35  ;;  %v136_v51 = vmul.f32 %v3216_v46, %v52_v35  ;;  %v138_v55 = vmul.f32 %v3218_v53, %v52_v35  ;;  %v3223_v46 = vperm.slane %v1553_v56, 5 }
  0x8b   :  { %v137_v21 = vmul.f32 %v3217_v52, %v52_v35  ;;  %v3224_v52 = vperm.slane %v1553_v56, 6  ;;  %v3225_v53 = vperm.slane %v1553_v56, 7  ;;  %v146_v31 = vmul.f32 %v3226_v54, %v52_v35 }
  0x8c   :  { %v143_v47 = vmul.f32 %v3223_v46, %v52_v35  ;;  %v147_v33 = vmul.f32 %v3227_v57, %v52_v35  ;;  %v148_v38 = vmul.f32 %v3228_v58, %v52_v35  ;;  %v149_v34 = vmul.f32 %v3229_v59, %v52_v35 }
  0x8d   :  { %v144_v28 = vmul.f32 %v3224_v52, %v52_v35  ;;  %v145_v30 = vmul.f32 %v3225_v53, %v52_v35  ;;  %v3230_v46 = vperm.slane %v1567_v1, 4  ;;  %v3231_v52 = vperm.slane %v1567_v1, 5 }
  0x8e   :  { %v3232_v56 = vperm.slane %v1567_v1, 6  ;;  %v3233_v54 = vperm.slane %v1567_v1, 7  ;;  %v1829_v57 = vadd.f32 %v157_v24, %v123_v8  ;;  %v1831_v58 = vadd.f32 %v157_v24, %v124_v10 }
  0x8f   :  { %v150_v61 = vmul.f32 %v3230_v46, %v52_v35  ;;  %v151_v39 = vmul.f32 %v3231_v52, %v52_v35  ;;  %v1835_v59 = vadd.f32 %v157_v24, %v126_v13  ;;  %v1837_v46 = vadd.f32 %v157_v24, %v127_v49 }
  0x90   :  { %v152_v53 = vmul.f32 %v3232_v56, %v52_v35  ;;  %v153_v50 = vmul.f32 %v3233_v54, %v52_v35  ;;  %v1841_v52 = vadd.f32 %v157_v24, %v129_v12  ;;  %v1843_v56 = vadd.f32 %v157_v24, %v130_v14 }
  0x91   :  { %v1845_v1 = vadd.f32 %v157_v24, %v131_v15  ;;  %v1847_v35 = vadd.f32 %v157_v24, %v132_v44  ;;  %v1849_v9 = vadd.f32 %v157_v24, %v133_v16  ;;  %v1851_v8 = vadd.f32 %v157_v24, %v134_v17  ;;  %v201_v15 = vpop.permute.xlu1 %200 }
  0x92   :  { %v1853_v10 = vadd.f32 %v157_v24, %v135_v18  ;;  %v1855_v11 = vadd.f32 %v157_v24, %v136_v51  ;;  %v1857_v13 = vadd.f32 %v157_v24, %v137_v21  ;;  %v1859_v60 = vadd.f32 %v157_v24, %v138_v55 }
  0x93   :  { %v1861_v12 = vadd.f32 %v157_v24, %v139_v22  ;;  %v1863_v14 = vadd.f32 %v157_v24, %v140_v23  ;;  %v1865_v49 = vadd.f32 %v157_v24, %v141_v41  ;;  %v1867_v44 = vadd.f32 %v157_v24, %v142_v27 }
  0x94   :  { %v1869_v16 = vadd.f32 %v157_v24, %v143_v47  ;;  %v1871_v17 = vadd.f32 %v157_v24, %v144_v28  ;;  %v1873_v18 = vadd.f32 %v157_v24, %v145_v30  ;;  %v1875_v51 = vadd.f32 %v157_v24, %v146_v31 }
  0x95   :  { %v1877_v21 = vadd.f32 %v157_v24, %v147_v33  ;;  %v1879_v55 = vadd.f32 %v157_v24, %v148_v38  ;;  %v1881_v22 = vadd.f32 %v157_v24, %v149_v34  ;;  %v1883_v23 = vadd.f32 %v157_v24, %v150_v61 }
  0x96   :  { %3234 = vst [vmem:[#allocation47_spill] sm:$0xff] %v1873_v18  ;;  %v1885_v41 = vadd.f32 %v157_v24, %v151_v39  ;;  %v1887_v27 = vadd.f32 %v157_v24, %v152_v53  ;;  %v1889_v47 = vadd.f32 %v157_v24, %v153_v50  ;;  %v3243_v28 = vperm.slane %v1503_v25, 0 }
  0x97   :  { %3235 = vst [vmem:[#allocation48_spill] sm:$0xff] %v1875_v51  ;;  %v3244_v31 = vperm.slane %v1503_v25, 1  ;;  %v3245_v33 = vperm.slane %v1503_v25, 2  ;;  %v3246_v34 = vperm.slane %v1503_v25, 3  ;;  %v3247_v61 = vperm.slane %v1503_v25, 4 }
  0x98   :  { %3236 = vst [vmem:[#allocation49_spill] sm:$0xff] %v1877_v21  ;;  %v271_v30 = vmul.f32 %v3243_v28, %v201_v15  ;;  %v3248_v53 = vperm.slane %v1503_v25, 5  ;;  %v3249_v50 = vperm.slane %v1503_v25, 6  ;;  %v3250_v28 = vperm.slane %v1503_v25, 7 }
  0x99   :  { %3237 = vst [vmem:[#allocation50_spill] sm:$0xff] %v1879_v55  ;;  %v272_v54 = vmul.f32 %v3244_v31, %v201_v15  ;;  %v273_v38 = vmul.f32 %v3245_v33, %v201_v15  ;;  %v274_v43 = vmul.f32 %v3246_v34, %v201_v15  ;;  %v275_v39 = vmul.f32 %v3247_v61, %v201_v15 }
  0x9a   :  { %3238 = vst [vmem:[#allocation51_spill] sm:$0xff] %v1881_v22  ;;  %v276_v37 = vmul.f32 %v3248_v53, %v201_v15  ;;  %v277_v24 = vmul.f32 %v3249_v50, %v201_v15  ;;  %v278_v32 = vmul.f32 %v3250_v28, %v201_v15  ;;  %v3251_v31 = vperm.slane %v1508_v26, 0 }
  0x9b   :  { %3239 = vst [vmem:[#allocation52_spill] sm:$0xff] %v1883_v23  ;;  %v3252_v33 = vperm.slane %v1508_v26, 1  ;;  %v3253_v34 = vperm.slane %v1508_v26, 2  ;;  %v3254_v61 = vperm.slane %v1508_v26, 3  ;;  %v3255_v53 = vperm.slane %v1508_v26, 4 }
  0x9c   :  { %3240 = vst [vmem:[#allocation53_spill] sm:$0xff] %v1885_v41  ;;  %v279_v63 = vmul.f32 %v3251_v31, %v201_v15  ;;  %v3256_v50 = vperm.slane %v1508_v26, 5  ;;  %v3257_v25 = vperm.slane %v1508_v26, 6  ;;  %v3258_v31 = vperm.slane %v1508_v26, 7 }
  0x9d   :  { %3241 = vst [vmem:[#allocation54_spill] sm:$0xff] %v1887_v27  ;;  %v280_v0 = vmul.f32 %v3252_v33, %v201_v15  ;;  %v281_v2 = vmul.f32 %v3253_v34, %v201_v15  ;;  %v282_v4 = vmul.f32 %v3254_v61, %v201_v15  ;;  %v283_v6 = vmul.f32 %v3255_v53, %v201_v15 }
  0x9e   :  { %3242 = vst [vmem:[#allocation55_spill] sm:$0xff] %v1889_v47  ;;  %v284_v20 = vmul.f32 %v3256_v50, %v201_v15  ;;  %v285_v28 = vmul.f32 %v3257_v25, %v201_v15  ;;  %v286_v5 = vmul.f32 %v3258_v31, %v201_v15  ;;  %v3259_v33 = vperm.slane %v1515_v29, 0 }
  0x9f   :  { %v3260_v34 = vperm.slane %v1515_v29, 1  ;;  %v3261_v61 = vperm.slane %v1515_v29, 2  ;;  %v3262_v53 = vperm.slane %v1515_v29, 3  ;;  %v3263_v50 = vperm.slane %v1515_v29, 4 }
  0xa0   :  { %v287_v7 = vmul.f32 %v3259_v33, %v201_v15  ;;  %v3264_v25 = vperm.slane %v1515_v29, 5  ;;  %v3265_v26 = vperm.slane %v1515_v29, 6  ;;  %v3266_v33 = vperm.slane %v1515_v29, 7 }
  0xa1   :  { %v288_v40 = vmul.f32 %v3260_v34, %v201_v15  ;;  %v289_v48 = vmul.f32 %v3261_v61, %v201_v15  ;;  %v290_v3 = vmul.f32 %v3262_v53, %v201_v15  ;;  %v291_v45 = vmul.f32 %v3263_v50, %v201_v15 }
  0xa2   :  { %v292_v47 = vmul.f32 %v3264_v25, %v201_v15  ;;  %v293_v31 = vmul.f32 %v3265_v26, %v201_v15  ;;  %v294_v27 = vmul.f32 %v3266_v33, %v201_v15  ;;  %v3267_v34 = vperm.slane %v1588_v19, 0 }
  0xa3   :  { %v3268_v61 = vperm.slane %v1588_v19, 1  ;;  %v3269_v53 = vperm.slane %v1588_v19, 2  ;;  %v3270_v50 = vperm.slane %v1588_v19, 3  ;;  %v3271_v25 = vperm.slane %v1588_v19, 4 }
  0xa4   :  { %v295_v41 = vmul.f32 %v3267_v34, %v201_v15  ;;  %v3272_v26 = vperm.slane %v1588_v19, 5  ;;  %v3273_v29 = vperm.slane %v1588_v19, 6  ;;  %v3274_v34 = vperm.slane %v1588_v19, 7 }
  0xa5   :  { %v296_v23 = vmul.f32 %v3268_v61, %v201_v15  ;;  %v297_v22 = vmul.f32 %v3269_v53, %v201_v15  ;;  %v298_v55 = vmul.f32 %v3270_v50, %v201_v15  ;;  %v299_v21 = vmul.f32 %v3271_v25, %v201_v15 }
  0xa6   :  { %v300_v51 = vmul.f32 %v3272_v26, %v201_v15  ;;  %v301_v33 = vmul.f32 %v3273_v29, %v201_v15  ;;  %v302_v18 = vmul.f32 %v3274_v34, %v201_v15  ;;  %v1956_v61 = vadd.f32 %v271_v30, %v1827_v62 }
  0xa7   :  { %v1959_v53 = vadd.f32 %v272_v54, %v1829_v57  ;;  %v1962_v50 = vadd.f32 %v273_v38, %v1831_v58  ;;  %v1965_v25 = vadd.f32 %v274_v43, %v1833_v42  ;;  %v1968_v26 = vadd.f32 %v275_v39, %v1835_v59 }
  0xa8   :  { %v1971_v29 = vadd.f32 %v276_v37, %v1837_v46  ;;  %v1974_v19 = vadd.f32 %v277_v24, %v1839_v36  ;;  %v1977_v62 = vadd.f32 %v278_v32, %v1841_v52  ;;  %v1980_v57 = vadd.f32 %v279_v63, %v1843_v56  ;;  %v3305_v24 = vld [vmem:[#allocation7_spill] sm:$0xff] }
  0xa9   :  { %v1983_v58 = vadd.f32 %v280_v0, %v1845_v1  ;;  %v1986_v43 = vadd.f32 %v281_v2, %v1847_v35  ;;  %v1989_v42 = vadd.f32 %v282_v4, %v1849_v9  ;;  %v1992_v37 = vadd.f32 %v283_v6, %v1851_v8  ;;  %v345_v6 = vpop.permute.xlu1 %344  ;;  %v3288_v8 = vld [vmem:[#allocation52_spill] sm:$0xff] }
  0xaa   :  { %v1995_v36 = vadd.f32 %v284_v20, %v1853_v10  ;;  %v1998_v32 = vadd.f32 %v285_v28, %v1855_v11  ;;  %v2001_v63 = vadd.f32 %v286_v5, %v1857_v13  ;;  %v2004_v0 = vadd.f32 %v287_v7, %v1859_v60  ;;  %v3278_v7 = vld [vmem:[#allocation47_spill] sm:$0xff]  ;;  %v3290_v11 = vld [vmem:[#allocation53_spill] sm:$0xff]  ;;  %v3292_v60 = vld [vmem:[#allocation54_spill] sm:$0xff] }
  0xab   :  { %v2007_v2 = vadd.f32 %v288_v40, %v1861_v12  ;;  %v2010_v4 = vadd.f32 %v289_v48, %v1863_v14  ;;  %v2013_v59 = vadd.f32 %v290_v3, %v1865_v49  ;;  %v2016_v20 = vadd.f32 %v291_v45, %v1867_v44  ;;  %v3280_v40 = vld [vmem:[#allocation48_spill] sm:$0xff]  ;;  %v3282_v48 = vld [vmem:[#allocation49_spill] sm:$0xff]  ;;  %v3284_v3 = vld [vmem:[#allocation50_spill] sm:$0xff] }
  0xac   :  { %v2019_v46 = vadd.f32 %v292_v47, %v1869_v16  ;;  %v2022_v5 = vadd.f32 %v293_v31, %v1871_v17  ;;  %v2025_v52 = vadd.f32 %v294_v27, %v3278_v7  ;;  %v2028_v56 = vadd.f32 %v295_v41, %v3280_v40  ;;  %v3286_v45 = vld [vmem:[#allocation51_spill] sm:$0xff]  ;;  %v3296_v49 = vld [vmem:[#allocation6_spill] sm:$0xff] }
  0xad   :  { %3275 = vst [vmem:[#allocation56_spill] sm:$0xff] %v2016_v20  ;;  %v2031_v1 = vadd.f32 %v296_v23, %v3282_v48  ;;  %v2034_v35 = vadd.f32 %v297_v22, %v3284_v3  ;;  %v2037_v9 = vadd.f32 %v298_v55, %v3286_v45  ;;  %v2040_v10 = vadd.f32 %v299_v21, %v3288_v8  ;;  %v3294_v14 = vld [vmem:[#allocation55_spill] sm:$0xff] }
  0xae   :  { %3276 = vst [vmem:[#allocation57_spill] sm:$0xff] %v2019_v46  ;;  %v2043_v13 = vadd.f32 %v300_v51, %v3290_v11  ;;  %v2046_v12 = vadd.f32 %v301_v33, %v3292_v60  ;;  %v2049_v15 = vadd.f32 %v302_v18, %v3294_v14  ;;  %v3297_v44 = vperm.slane %v3296_v49, 0 }
  0xaf   :  { %3277 = vst [vmem:[#allocation58_spill] sm:$0xff] %v2022_v5  ;;  %v3298_v17 = vperm.slane %v3296_v49, 1  ;;  %v3299_v55 = vperm.slane %v3296_v49, 2  ;;  %v3300_v21 = vperm.slane %v3296_v49, 3  ;;  %v3301_v51 = vperm.slane %v3296_v49, 4 }
  0xb0   :  { %3279 = vst [vmem:[#allocation47_spill] sm:$0xff] %v2025_v52  ;;  %v415_v16 = vmul.f32 %v3297_v44, %v345_v6  ;;  %v3302_v47 = vperm.slane %v3296_v49, 5  ;;  %v3303_v18 = vperm.slane %v3296_v49, 6  ;;  %v3304_v38 = vperm.slane %v3296_v49, 7 }
  0xb1   :  { %3281 = vst [vmem:[#allocation48_spill] sm:$0xff] %v2028_v56  ;;  %v416_v22 = vmul.f32 %v3298_v17, %v345_v6  ;;  %v417_v23 = vmul.f32 %v3299_v55, %v345_v6  ;;  %v418_v41 = vmul.f32 %v3300_v21, %v345_v6  ;;  %v419_v27 = vmul.f32 %v3301_v51, %v345_v6  ;;  %v3314_v55 = vld [vmem:[#allocation8_spill] sm:$0xff] }
  0xb2   :  { %3283 = vst [vmem:[#allocation49_spill] sm:$0xff] %v2031_v1  ;;  %v420_v30 = vmul.f32 %v3302_v47, %v345_v6  ;;  %v421_v54 = vmul.f32 %v3303_v18, %v345_v6  ;;  %v422_v39 = vmul.f32 %v3304_v38, %v345_v6  ;;  %v3306_v28 = vperm.slane %v3305_v24, 0 }
  0xb3   :  { %3285 = vst [vmem:[#allocation50_spill] sm:$0xff] %v2034_v35  ;;  %v3307_v33 = vperm.slane %v3305_v24, 1  ;;  %v3308_v7 = vperm.slane %v3305_v24, 2  ;;  %v3309_v48 = vperm.slane %v3305_v24, 3  ;;  %v3310_v45 = vperm.slane %v3305_v24, 4 }
  0xb4   :  { %3287 = vst [vmem:[#allocation51_spill] sm:$0xff] %v2037_v9  ;;  %v423_v31 = vmul.f32 %v3306_v28, %v345_v6  ;;  %v3311_v11 = vperm.slane %v3305_v24, 5  ;;  %v3312_v14 = vperm.slane %v3305_v24, 6  ;;  %v3313_v44 = vperm.slane %v3305_v24, 7 }
  0xb5   :  { %3289 = vst [vmem:[#allocation52_spill] sm:$0xff] %v2040_v10  ;;  %v424_v34 = vmul.f32 %v3307_v33, %v345_v6  ;;  %v425_v40 = vmul.f32 %v3308_v7, %v345_v6  ;;  %v426_v3 = vmul.f32 %v3309_v48, %v345_v6  ;;  %v427_v8 = vmul.f32 %v3310_v45, %v345_v6 }
  0xb6   :  { %3291 = vst [vmem:[#allocation53_spill] sm:$0xff] %v2043_v13  ;;  %v428_v60 = vmul.f32 %v3311_v11, %v345_v6  ;;  %v429_v49 = vmul.f32 %v3312_v14, %v345_v6  ;;  %v430_v17 = vmul.f32 %v3313_v44, %v345_v6  ;;  %v3315_v21 = vperm.slane %v3314_v55, 0 }
  0xb7   :  { %3293 = vst [vmem:[#allocation54_spill] sm:$0xff] %v2046_v12  ;;  %v3316_v47 = vperm.slane %v3314_v55, 1  ;;  %v3317_v38 = vperm.slane %v3314_v55, 2  ;;  %v3318_v33 = vperm.slane %v3314_v55, 3  ;;  %v3319_v48 = vperm.slane %v3314_v55, 4  ;;  %v3323_v12 = vld [vmem:[#allocation9_spill] sm:$0xff] }
  0xb8   :  { %3295 = vst [vmem:[#allocation55_spill] sm:$0xff] %v2049_v15  ;;  %v431_v51 = vmul.f32 %v3315_v21, %v345_v6  ;;  %v3320_v11 = vperm.slane %v3314_v55, 5  ;;  %v3321_v24 = vperm.slane %v3314_v55, 6  ;;  %v3322_v21 = vperm.slane %v3314_v55, 7 }
  0xb9   :  { %v432_v18 = vmul.f32 %v3316_v47, %v345_v6  ;;  %v433_v28 = vmul.f32 %v3317_v38, %v345_v6  ;;  %v434_v7 = vmul.f32 %v3318_v33, %v345_v6  ;;  %v435_v45 = vmul.f32 %v3319_v48, %v345_v6 }
  0xba   :  { %v436_v14 = vmul.f32 %v3320_v11, %v345_v6  ;;  %v437_v44 = vmul.f32 %v3321_v24, %v345_v6  ;;  %v438_v15 = vmul.f32 %v3322_v21, %v345_v6  ;;  %v3324_v47 = vperm.slane %v3323_v12, 0 }
  0xbb   :  { %v3325_v38 = vperm.slane %v3323_v12, 1  ;;  %v3326_v33 = vperm.slane %v3323_v12, 2  ;;  %v3327_v48 = vperm.slane %v3323_v12, 3  ;;  %v3328_v11 = vperm.slane %v3323_v12, 4 }
  0xbc   :  { %v439_v13 = vmul.f32 %v3324_v47, %v345_v6  ;;  %v3329_v24 = vperm.slane %v3323_v12, 5  ;;  %v3330_v55 = vperm.slane %v3323_v12, 6  ;;  %v3331_v47 = vperm.slane %v3323_v12, 7  ;;  %v3332_v12 = vld [vmem:[#allocation56_spill] sm:$0xff] }
  0xbd   :  { %v440_v10 = vmul.f32 %v3325_v38, %v345_v6  ;;  %v441_v9 = vmul.f32 %v3326_v33, %v345_v6  ;;  %v442_v35 = vmul.f32 %v3327_v48, %v345_v6  ;;  %v443_v1 = vmul.f32 %v3328_v11, %v345_v6 }
  0xbe   :  { %v444_v56 = vmul.f32 %v3329_v24, %v345_v6  ;;  %v445_v21 = vmul.f32 %v3330_v55, %v345_v6  ;;  %v446_v52 = vmul.f32 %v3331_v47, %v345_v6  ;;  %v447_v38 = vadd.f32 %v415_v16, %v1956_v61  ;;  %v3333_v16 = vld [vmem:[#allocation57_spill] sm:$0xff]  ;;  %v3354_v47 = vld [vmem:[#allocation20_spill] sm:$0xff] }
  0xbf   :  { %v448_v5 = vadd.f32 %v416_v22, %v1959_v53  ;;  %v449_v33 = vadd.f32 %v417_v23, %v1962_v50  ;;  %v450_v48 = vadd.f32 %v418_v41, %v1965_v25  ;;  %v451_v46 = vadd.f32 %v419_v27, %v1968_v26  ;;  %v3334_v22 = vld [vmem:[#allocation58_spill] sm:$0xff]  ;;  %v3335_v23 = vld [vmem:[#allocation47_spill] sm:$0xff]  ;;  %v3336_v41 = vld [vmem:[#allocation48_spill] sm:$0xff] }
  0xc0   :  { %v452_v11 = vadd.f32 %v420_v30, %v1971_v29  ;;  %v453_v24 = vadd.f32 %v421_v54, %v1974_v19  ;;  %v454_v20 = vadd.f32 %v422_v39, %v1977_v62  ;;  %v455_v55 = vadd.f32 %v423_v31, %v1980_v57  ;;  %v3337_v27 = vld [vmem:[#allocation49_spill] sm:$0xff]  ;;  %v3338_v30 = vld [vmem:[#allocation50_spill] sm:$0xff]  ;;  %v3339_v54 = vld [vmem:[#allocation51_spill] sm:$0xff] }
  0xc1   :  { %v456_v6 = vadd.f32 %v424_v34, %v1983_v58  ;;  %v457_v61 = vadd.f32 %v425_v40, %v1986_v43  ;;  %v458_v53 = vadd.f32 %v426_v3, %v1989_v42  ;;  %v459_v50 = vadd.f32 %v427_v8, %v1992_v37  ;;  %v3340_v39 = vld [vmem:[#allocation52_spill] sm:$0xff]  ;;  %v3341_v31 = vld [vmem:[#allocation53_spill] sm:$0xff]  ;;  %v3342_v34 = vld [vmem:[#allocation54_spill] sm:$0xff] }
  0xc2   :  { %v460_v25 = vadd.f32 %v428_v60, %v1995_v36  ;;  %v461_v26 = vadd.f32 %v429_v49, %v1998_v32  ;;  %v462_v29 = vadd.f32 %v430_v17, %v2001_v63  ;;  %v463_v19 = vadd.f32 %v431_v51, %v2004_v0  ;;  %v3343_v3 = vld [vmem:[#allocation55_spill] sm:$0xff]  ;;  %v3344_v60 = vld [vmem:[#allocation10_spill] sm:$0xff] }
  0xc3   :  { %v464_v62 = vadd.f32 %v432_v18, %v2007_v2  ;;  %v465_v57 = vadd.f32 %v433_v28, %v2010_v4  ;;  %v466_v58 = vadd.f32 %v434_v7, %v2013_v59  ;;  %v467_v43 = vadd.f32 %v435_v45, %v3332_v12  ;;  %v3350_v28 = vld [vmem:[#allocation16_spill] sm:$0xff]  ;;  %v3351_v7 = vld [vmem:[#allocation17_spill] sm:$0xff]  ;;  %v3357_v12 = vld [vmem:[#allocation23_spill] sm:$0xff] }
  0xc4   :  { %v468_v42 = vadd.f32 %v436_v14, %v3333_v16  ;;  %v469_v37 = vadd.f32 %v437_v44, %v3334_v22  ;;  %v470_v36 = vadd.f32 %v438_v15, %v3335_v23  ;;  %v471_v32 = vadd.f32 %v439_v13, %v3336_v41  ;;  %v3345_v15 = vld [vmem:[#allocation11_spill] sm:$0xff]  ;;  %v3346_v13 = vld [vmem:[#allocation12_spill] sm:$0xff]  ;;  %v3359_v22 = vld [vmem:[#allocation25_spill] sm:$0xff] }
  0xc5   :  { %v472_v63 = vadd.f32 %v440_v10, %v3337_v27  ;;  %v473_v0 = vadd.f32 %v441_v9, %v3338_v30  ;;  %v474_v2 = vadd.f32 %v442_v35, %v3339_v54  ;;  %v475_v4 = vadd.f32 %v443_v1, %v3340_v39  ;;  %v3347_v9 = vld [vmem:[#allocation13_spill] sm:$0xff]  ;;  %v3348_v35 = vld [vmem:[#allocation14_spill] sm:$0xff]  ;;  %v3353_v44 = vld [vmem:[#allocation19_spill] sm:$0xff] }
  0xc6   :  { %v476_v59 = vadd.f32 %v444_v56, %v3341_v31  ;;  %v477_v40 = vadd.f32 %v445_v21, %v3342_v34  ;;  %v478_v8 = vadd.f32 %v446_v52, %v3343_v3  ;;  %v2148_v49 = vadd.f32 %v3344_v60, %v447_v38  ;;  %v3349_v56 = vld [vmem:[#allocation15_spill] sm:$0xff]  ;;  %v3358_v16 = vld [vmem:[#allocation24_spill] sm:$0xff]  ;;  %v3360_v23 = vld [vmem:[#allocation26_spill] sm:$0xff] }
  0xc7   :  { %v2151_v17 = vadd.f32 %v3345_v15, %v448_v5  ;;  %v2154_v10 = vadd.f32 %v3346_v13, %v449_v33  ;;  %v2157_v51 = vadd.f32 %v3347_v9, %v450_v48  ;;  %v2160_v1 = vadd.f32 %v3348_v35, %v451_v46  ;;  %v3352_v5 = vld [vmem:[#allocation18_spill] sm:$0xff]  ;;  %v2180_v46 = vpop.permute.xlu2 %732  ;;  %v3355_v33 = vld [vmem:[#allocation21_spill] sm:$0xff]  ;;  %v3361_v41 = vld [vmem:[#allocation27_spill] sm:$0xff] }
  0xc8   :  { %v2163_v18 = vadd.f32 %v3349_v56, %v452_v11  ;;  %v2166_v52 = vadd.f32 %v3350_v28, %v453_v24  ;;  %v2169_v45 = vadd.f32 %v3351_v7, %v454_v20  ;;  %v2172_v14 = vadd.f32 %v3352_v5, %v455_v55  ;;  %v3356_v11 = vld [vmem:[#allocation22_spill] sm:$0xff] }
  0xc9   :  { %v2175_v21 = vadd.f32 %v3353_v44, %v456_v6  ;;  %v2178_v38 = vadd.f32 %v3354_v47, %v457_v61  ;;  %v2183_v48 = vadd.f32 %v3355_v33, %v458_v53  ;;  %v2186_v24 = vadd.f32 %v3356_v11, %v459_v50  ;;  %v3362_v53 = vld [vmem:[#allocation28_spill] sm:$0xff]  ;;  %v3363_v50 = vld [vmem:[#allocation29_spill] sm:$0xff] }
  0xca   :  { %v2189_v20 = vadd.f32 %v3357_v12, %v460_v25  ;;  %v2192_v55 = vadd.f32 %v3358_v16, %v461_v26  ;;  %v2195_v6 = vadd.f32 %v3359_v22, %v462_v29  ;;  %v2198_v61 = vadd.f32 %v3360_v23, %v463_v19  ;;  %v3364_v25 = vld [vmem:[#allocation30_spill] sm:$0xff]  ;;  %v3365_v26 = vld [vmem:[#allocation31_spill] sm:$0xff]  ;;  %v3366_v29 = vld [vmem:[#allocation32_spill] sm:$0xff] }
  0xcb   :  { %v2201_v27 = vadd.f32 %v3361_v41, %v464_v62  ;;  %v2204_v30 = vadd.f32 %v3362_v53, %v465_v57  ;;  %v2207_v54 = vadd.f32 %v3363_v50, %v466_v58  ;;  %v2210_v39 = vadd.f32 %v3364_v25, %v467_v43  ;;  %v3367_v19 = vld [vmem:[#allocation33_spill] sm:$0xff]  ;;  %v3368_v62 = vld [vmem:[#allocation34_spill] sm:$0xff]  ;;  %v3369_v57 = vld [vmem:[#allocation35_spill] sm:$0xff] }
  0xcc   :  { %v2213_v31 = vadd.f32 %v3365_v26, %v468_v42  ;;  %v2216_v34 = vadd.f32 %v3366_v29, %v469_v37  ;;  %v2219_v3 = vadd.f32 %v3367_v19, %v470_v36  ;;  %v2222_v60 = vadd.f32 %v3368_v62, %v471_v32  ;;  %v3370_v58 = vld [vmem:[#allocation36_spill] sm:$0xff]  ;;  %v3371_v43 = vld [vmem:[#allocation37_spill] sm:$0xff]  ;;  %v3372_v42 = vld [vmem:[#allocation38_spill] sm:$0xff] }
  0xcd   :  { %v2225_v15 = vadd.f32 %v3369_v57, %v472_v63  ;;  %v2228_v13 = vadd.f32 %v3370_v58, %v473_v0  ;;  %v2231_v9 = vadd.f32 %v3371_v43, %v474_v2  ;;  %v2234_v35 = vadd.f32 %v3372_v42, %v475_v4  ;;  %v3373_v37 = vld [vmem:[#allocation39_spill] sm:$0xff]  ;;  %v3374_v36 = vld [vmem:[#allocation40_spill] sm:$0xff]  ;;  %v3375_v32 = vld [vmem:[#allocation41_spill] sm:$0xff] }
  0xce   :  { %v2237_v56 = vadd.f32 %v3373_v37, %v476_v59  ;;  %v2240_v28 = vadd.f32 %v3374_v36, %v477_v40  ;;  %v2243_v7 = vadd.f32 %v3375_v32, %v478_v8  ;;  %v623_v63 = vmax.f32 %v2148_v49, 0.0  ;;  %v3376_v41 = vld [vmem:[#allocation42_spill] sm:$0xff]  ;;  %v3378_v36 = vld [vmem:[#allocation44_spill] sm:$0xff] }
  0xcf   :  { %v624_v0 = vmax.f32 %v2151_v17, 0.0  ;;  %v625_v5 = vmax.f32 %v2154_v10, 0.0  ;;  %v626_v2 = vmax.f32 %v2157_v51, 0.0  ;;  %v627_v4 = vmax.f32 %v2160_v1, 0.0  ;;  %v2264_v33 = vpop.permute.xlu2 %808 }
  0xd0   :  { %v628_v44 = vmax.f32 %v2163_v18, 0.0  ;;  %v629_v59 = vmax.f32 %v2166_v52, 0.0  ;;  %v630_v40 = vmax.f32 %v2169_v45, 0.0  ;;  %v631_v47 = vmax.f32 %v2172_v14, 0.0 }
  0xd1   :  { %v632_v8 = vmax.f32 %v2175_v21, 0.0  ;;  %v633_v49 = vmax.f32 %v2178_v38, 0.0  ;;  %v634_v17 = vmax.f32 %v2183_v48, 0.0  ;;  %v635_v10 = vmax.f32 %v2186_v24, 0.0 }
  0xd2   :  { %v636_v51 = vmax.f32 %v2189_v20, 0.0  ;;  %v637_v1 = vmax.f32 %v2192_v55, 0.0  ;;  %v638_v18 = vmax.f32 %v2195_v6, 0.0  ;;  %v639_v52 = vmax.f32 %v2198_v61, 0.0 }
  0xd3   :  { %v640_v45 = vmax.f32 %v2201_v27, 0.0  ;;  %v641_v14 = vmax.f32 %v2204_v30, 0.0  ;;  %v642_v21 = vmax.f32 %v2207_v54, 0.0  ;;  %v643_v38 = vmax.f32 %v2210_v39, 0.0 }
  0xd4   :  { %v644_v48 = vmax.f32 %v2213_v31, 0.0  ;;  %v645_v11 = vmax.f32 %v2216_v34, 0.0  ;;  %v646_v24 = vmax.f32 %v2219_v3, 0.0  ;;  %v647_v12 = vmax.f32 %v2222_v60, 0.0  ;;  %v3377_v31 = vld [vmem:[#allocation43_spill] sm:$0xff] }
  0xd5   :  { %v648_v20 = vmax.f32 %v2225_v15, 0.0  ;;  %v649_v16 = vmax.f32 %v2228_v13, 0.0  ;;  %v650_v55 = vmax.f32 %v2231_v9, 0.0  ;;  %v651_v22 = vmax.f32 %v2234_v35, 0.0 }
  0xd6   :  { %v652_v6 = vmax.f32 %v2237_v56, 0.0  ;;  %v653_v23 = vmax.f32 %v2240_v28, 0.0  ;;  %v654_v61 = vmax.f32 %v2243_v7, 0.0  ;;  %v657_v27 = vmul.f32 %v3376_v41, %v623_v63 }
  0xd7   :  { %v658_v53 = vmul.f32 %v3376_v41, %v624_v0  ;;  %v659_v30 = vmul.f32 %v3376_v41, %v625_v5  ;;  %v660_v50 = vmul.f32 %v3376_v41, %v626_v2  ;;  %v661_v54 = vmul.f32 %v3376_v41, %v627_v4  ;;  %v2298_v63 = vpop.permute.xlu2 %864 }
  0xd8   :  { %v662_v25 = vmul.f32 %v3376_v41, %v628_v44  ;;  %v663_v39 = vmul.f32 %v3376_v41, %v629_v59  ;;  %v664_v26 = vmul.f32 %v3376_v41, %v630_v40  ;;  %v667_v29 = vmul.f32 %v3377_v31, %v631_v47 }
  0xd9   :  { %v668_v34 = vmul.f32 %v3377_v31, %v632_v8  ;;  %v669_v19 = vmul.f32 %v3377_v31, %v633_v49  ;;  %v670_v3 = vmul.f32 %v3377_v31, %v634_v17  ;;  %v671_v62 = vmul.f32 %v3377_v31, %v635_v10 }
  0xda   :  { %v672_v60 = vmul.f32 %v3377_v31, %v636_v51  ;;  %v673_v57 = vmul.f32 %v3377_v31, %v637_v1  ;;  %v674_v15 = vmul.f32 %v3377_v31, %v638_v18  ;;  %v675_v58 = vadd.f32 %v667_v29, %v657_v27  ;;  %v3379_v1 = vld [vmem:[#allocation45_spill] sm:$0xff] }
  0xdb   :  { %v676_v13 = vadd.f32 %v668_v34, %v658_v53  ;;  %v677_v43 = vadd.f32 %v669_v19, %v659_v30  ;;  %v678_v9 = vadd.f32 %v670_v3, %v660_v50  ;;  %v679_v42 = vadd.f32 %v671_v62, %v661_v54  ;;  %v3380_v54 = vld [vmem:[#allocation46_spill] sm:$0xff] }
  0xdc   :  { %v680_v35 = vadd.f32 %v672_v60, %v662_v25  ;;  %v681_v37 = vadd.f32 %v673_v57, %v663_v39  ;;  %v682_v56 = vadd.f32 %v674_v15, %v664_v26  ;;  %v685_v28 = vmul.f32 %v3378_v36, %v639_v52 }
  0xdd   :  { %v686_v32 = vmul.f32 %v3378_v36, %v640_v45  ;;  %v687_v7 = vmul.f32 %v3378_v36, %v641_v14  ;;  %v688_v0 = vmul.f32 %v3378_v36, %v642_v21  ;;  %v689_v5 = vmul.f32 %v3378_v36, %v643_v38 }
  0xde   :  { %v690_v2 = vmul.f32 %v3378_v36, %v644_v48  ;;  %v691_v4 = vmul.f32 %v3378_v36, %v645_v11  ;;  %v692_v44 = vmul.f32 %v3378_v36, %v646_v24  ;;  %v693_v59 = vadd.f32 %v685_v28, %v675_v58 }
  0xdf   :  { %v694_v40 = vadd.f32 %v686_v32, %v676_v13  ;;  %v695_v47 = vadd.f32 %v687_v7, %v677_v43  ;;  %v696_v8 = vadd.f32 %v688_v0, %v678_v9  ;;  %v697_v49 = vadd.f32 %v689_v5, %v679_v42  ;;  %v949_v34 = vpop.permute.xlu2 %948  ;;  %v781_v32 = vpop.permute.xlu1 %780 }
  0xe0   :  { %v698_v17 = vadd.f32 %v690_v2, %v680_v35  ;;  %v699_v10 = vadd.f32 %v691_v4, %v681_v37  ;;  %v700_v51 = vadd.f32 %v692_v44, %v682_v56  ;;  %v703_v18 = vmul.f32 %v3379_v1, %v647_v12 }
  0xe1   :  { %v704_v52 = vmul.f32 %v3379_v1, %v648_v20  ;;  %v705_v45 = vmul.f32 %v3379_v1, %v649_v16  ;;  %v706_v14 = vmul.f32 %v3379_v1, %v650_v55  ;;  %v707_v21 = vmul.f32 %v3379_v1, %v651_v22 }
  0xe2   :  { %v708_v38 = vmul.f32 %v3379_v1, %v652_v6  ;;  %v709_v48 = vmul.f32 %v3379_v1, %v653_v23  ;;  %v710_v11 = vmul.f32 %v3379_v1, %v654_v61  ;;  %v711_v24 = vadd.f32 %v703_v18, %v693_v59 }
  0xe3   :  { %v712_v41 = vadd.f32 %v704_v52, %v694_v40  ;;  %v713_v27 = vadd.f32 %v705_v45, %v695_v47  ;;  %v714_v53 = vadd.f32 %v706_v14, %v696_v8  ;;  %v715_v30 = vadd.f32 %v707_v21, %v697_v49 }
  0xe4   :  { %v716_v12 = vadd.f32 %v708_v38, %v698_v17  ;;  %v717_v50 = vadd.f32 %v709_v48, %v699_v10  ;;  %v718_v20 = vadd.f32 %v710_v11, %v700_v51  ;;  %v2314_v16 = vadd.f32 %v3380_v54, %v711_v24 }
  0xe5   :  { %v2317_v55 = vadd.f32 %v3380_v54, %v712_v41  ;;  %v2320_v22 = vadd.f32 %v3380_v54, %v713_v27  ;;  %v2323_v6 = vadd.f32 %v3380_v54, %v714_v53  ;;  %v2326_v23 = vadd.f32 %v3380_v54, %v715_v30  ;;  %v753_v30 = vpop.permute.xlu0 %752 }
  0xe6   :  { %v2329_v61 = vadd.f32 %v3380_v54, %v716_v12  ;;  %v2332_v25 = vadd.f32 %v3380_v54, %v717_v50  ;;  %v2335_v39 = vadd.f32 %v3380_v54, %v718_v20  ;;  %v2338_v26 = vperm.slane %v2314_v16, 0 }
  0xe7   :  { %v2341_v31 = vperm.slane %v2317_v55, 0  ;;  %v2344_v29 = vperm.slane %v2320_v22, 0  ;;  %v2347_v19 = vperm.slane %v2323_v6, 0  ;;  %v2350_v3 = vperm.slane %v2326_v23, 0 }
  0xe8   :  { %v2353_v62 = vperm.slane %v2329_v61, 0  ;;  %v2356_v60 = vperm.slane %v2332_v25, 0  ;;  %v2359_v57 = vperm.slane %v2335_v39, 0  ;;  %v2362_v15 = vmul.f32 %v949_v34, %v2338_v26 }
  0xe9   :  { %3381 = vst [vmem:[#allocation6_spill] sm:$0xff] %v2344_v29  ;;  %v2365_v58 = vmul.f32 %v949_v34, %v2341_v31  ;;  %v2368_v13 = vmul.f32 %v949_v34, %v2344_v29  ;;  %v2371_v43 = vmul.f32 %v949_v34, %v2347_v19  ;;  %v2374_v9 = vmul.f32 %v949_v34, %v2350_v3 }
  0xea   :  { %3382 = vst [vmem:[#allocation7_spill] sm:$0xff] %v2347_v19  ;;  %v2377_v42 = vmul.f32 %v949_v34, %v2353_v62  ;;  %v2380_v35 = vmul.f32 %v949_v34, %v2356_v60  ;;  %v2383_v37 = vmul.f32 %v949_v34, %v2359_v57  ;;  %v2386_v56 = vperm.slane %v2314_v16, 2 }
  0xeb   :  { %3383 = vst [vmem:[#allocation8_spill] sm:$0xff] %v2350_v3  ;;  %v2389_v36 = vperm.slane %v2317_v55, 2  ;;  %v2392_v28 = vperm.slane %v2320_v22, 2  ;;  %v2395_v7 = vperm.slane %v2323_v6, 2  ;;  %v2398_v0 = vperm.slane %v2326_v23, 2 }
  0xec   :  { %3384 = vst [vmem:[#allocation9_spill] sm:$0xff] %v2353_v62  ;;  %v2401_v5 = vperm.slane %v2329_v61, 2  ;;  %v2404_v2 = vperm.slane %v2332_v25, 2  ;;  %v2407_v4 = vperm.slane %v2335_v39, 2  ;;  %v791_v44 = vmul.f32 %v2386_v56, %v781_v32 }
  0xed   :  { %3385 = vst [vmem:[#allocation56_spill] sm:$0xff] %v2356_v60  ;;  %v792_v59 = vmul.f32 %v2389_v36, %v781_v32  ;;  %v793_v40 = vmul.f32 %v2392_v28, %v781_v32  ;;  %v794_v47 = vmul.f32 %v2395_v7, %v781_v32  ;;  %v795_v8 = vmul.f32 %v2398_v0, %v781_v32 }
  0xee   :  { %3386 = vst [vmem:[#allocation57_spill] sm:$0xff] %v2359_v57  ;;  %v796_v49 = vmul.f32 %v2401_v5, %v781_v32  ;;  %v797_v17 = vmul.f32 %v2404_v2, %v781_v32  ;;  %v798_v10 = vmul.f32 %v2407_v4, %v781_v32  ;;  %v743_v51 = vmul.f32 %v2338_v26, %v2180_v46 }
  0xef   :  { %3387 = vst [vmem:[#allocation58_spill] sm:$0xff] %v2362_v15  ;;  %v744_v1 = vmul.f32 %v2341_v31, %v2180_v46  ;;  %v745_v18 = vmul.f32 %v2344_v29, %v2180_v46  ;;  %v746_v52 = vmul.f32 %v2347_v19, %v2180_v46  ;;  %v747_v45 = vmul.f32 %v2350_v3, %v2180_v46 }
  0xf0   :  { %3388 = vst [vmem:[#allocation47_spill] sm:$0xff] %v2365_v58  ;;  %v748_v14 = vmul.f32 %v2353_v62, %v2180_v46  ;;  %v749_v21 = vmul.f32 %v2356_v60, %v2180_v46  ;;  %v750_v38 = vmul.f32 %v2359_v57, %v2180_v46  ;;  %v2434_v48 = vperm.slane %v2314_v16, 1 }
  0xf1   :  { %3389 = vst [vmem:[#allocation48_spill] sm:$0xff] %v2368_v13  ;;  %v2437_v11 = vperm.slane %v2317_v55, 1  ;;  %v2440_v24 = vperm.slane %v2320_v22, 1  ;;  %v2443_v41 = vperm.slane %v2323_v6, 1  ;;  %v2446_v27 = vperm.slane %v2326_v23, 1 }
  0xf2   :  { %3390 = vst [vmem:[#allocation49_spill] sm:$0xff] %v2371_v43  ;;  %v2449_v53 = vperm.slane %v2329_v61, 1  ;;  %v2452_v46 = vperm.slane %v2332_v25, 1  ;;  %v2455_v12 = vperm.slane %v2335_v39, 1  ;;  %v763_v50 = vmul.f32 %v2434_v48, %v753_v30 }
  0xf3   :  { %3391 = vst [vmem:[#allocation50_spill] sm:$0xff] %v2374_v9  ;;  %v764_v20 = vmul.f32 %v2437_v11, %v753_v30  ;;  %v765_v54 = vmul.f32 %v2440_v24, %v753_v30  ;;  %v766_v34 = vmul.f32 %v2443_v41, %v753_v30  ;;  %v767_v32 = vmul.f32 %v2446_v27, %v753_v30 }
  0xf4   :  { %3392 = vst [vmem:[#allocation51_spill] sm:$0xff] %v2377_v42  ;;  %v770_v42 = vmul.f32 %v2455_v12, %v753_v30  ;;  %v771_v9 = vadd.f32 %v763_v50, %v743_v51 }
  0xf5   :  { %3393 = vst [vmem:[#allocation52_spill] sm:$0xff] %v2380_v35  ;;  %v769_v35 = vmul.f32 %v2452_v46, %v753_v30  ;;  %v772_v43 = vadd.f32 %v764_v20, %v744_v1  ;;  %v773_v13 = vadd.f32 %v765_v54, %v745_v18  ;;  %v774_v58 = vadd.f32 %v766_v34, %v746_v52 }
  0xf6   :  { %3394 = vst [vmem:[#allocation53_spill] sm:$0xff] %v2383_v37  ;;  %v768_v37 = vmul.f32 %v2449_v53, %v753_v30  ;;  %v775_v15 = vadd.f32 %v767_v32, %v747_v45  ;;  %v799_v60 = vadd.f32 %v791_v44, %v771_v9  ;;  %v2493_v9 = vperm.slane %v2317_v55, 3 }
  0xf7   :  { %3395 = vst [vmem:[#allocation54_spill] sm:$0xff] %v2386_v56  ;;  %v777_v57 = vadd.f32 %v769_v35, %v749_v21  ;;  %v801_v62 = vadd.f32 %v793_v40, %v773_v13  ;;  %v2496_v35 = vperm.slane %v2320_v22, 3  ;;  %v2502_v44 = vperm.slane %v2326_v23, 3 }
  0xf8   :  { %3396 = vst [vmem:[#allocation55_spill] sm:$0xff] %v2389_v36  ;;  %v803_v3 = vadd.f32 %v795_v8, %v775_v15  ;;  %v2508_v40 = vperm.slane %v2332_v25, 3  ;;  %v2530_v34 = vperm.slane %v2314_v16, 4  ;;  %v2533_v32 = vperm.slane %v2317_v55, 4 }
  0xf9   :  { %3397 = vst [vmem:[#allocation10_spill] sm:$0xff] %v2392_v28  ;;  %v805_v19 = vadd.f32 %v797_v17, %v777_v57  ;;  %v821_v17 = vmul.f32 %v2496_v35, %v2264_v33  ;;  %v823_v52 = vmul.f32 %v2502_v44, %v2264_v33 }
  0xfa   :  { %3398 = vst [vmem:[#allocation11_spill] sm:$0xff] %v2395_v7 }
  0xfb   :  { %3399 = vst [vmem:[#allocation12_spill] sm:$0xff] %v2398_v0  ;;  %v831_v30 = vadd.f32 %v823_v52, %v803_v3  ;;  %v2545_v3 = vperm.slane %v2329_v61, 4 }
  0xfc   :  { %3400 = vst [vmem:[#allocation13_spill] sm:$0xff] %v2401_v5 }
  0xfd   :  { %3401 = vst [vmem:[#allocation14_spill] sm:$0xff] %v2404_v2 }
  0xfe   :  { %3402 = vst [vmem:[#allocation15_spill] sm:$0xff] %v2407_v4 }
  0xff   :  { %3403 = vst [vmem:[#allocation16_spill] sm:$0xff] %v2434_v48  ;;  %v776_v48 = vadd.f32 %v768_v37, %v748_v14  ;;  %v2499_v37 = vperm.slane %v2323_v6, 3  ;;  %v825_v14 = vmul.f32 %v2508_v40, %v2264_v33 }
 0x100   :  { %3404 = vst [vmem:[#allocation17_spill] sm:$0xff] %v2437_v11  ;;  %v778_v11 = vadd.f32 %v770_v42, %v750_v38 }
 0x101   :  { %3405 = vst [vmem:[#allocation18_spill] sm:$0xff] %v2440_v24  ;;  %v800_v24 = vadd.f32 %v792_v59, %v772_v43  ;;  %v2490_v43 = vperm.slane %v2314_v16, 3  ;;  %v2505_v59 = vperm.slane %v2329_v61, 3  ;;  %v822_v18 = vmul.f32 %v2499_v37, %v2264_v33 }
 0x102   :  { %3406 = vst [vmem:[#allocation19_spill] sm:$0xff] %v2443_v41  ;;  %v802_v41 = vadd.f32 %v794_v47, %v774_v58  ;;  %v806_v29 = vadd.f32 %v798_v10, %v778_v11  ;;  %v2511_v47 = vperm.slane %v2335_v39, 3  ;;  %v837_v10 = vpop.permute.xlu1 %836  ;;  %v829_v11 = vadd.f32 %v821_v17, %v801_v62 }
 0x103   :  { %3407 = vst [vmem:[#allocation20_spill] sm:$0xff] %v2446_v27  ;;  %v804_v27 = vadd.f32 %v796_v49, %v776_v48  ;;  %v819_v8 = vmul.f32 %v2490_v43, %v2264_v33  ;;  %v820_v49 = vmul.f32 %v2493_v9, %v2264_v33  ;;  %v824_v45 = vmul.f32 %v2505_v59, %v2264_v33 }
 0x104   :  { %3408 = vst [vmem:[#allocation21_spill] sm:$0xff] %v2449_v53  ;;  %v981_v53 = vpop.permute.xlu2 %980  ;;  %v826_v21 = vmul.f32 %v2511_v47, %v2264_v33  ;;  %v833_v20 = vadd.f32 %v825_v14, %v805_v19  ;;  %v2542_v33 = vperm.slane %v2326_v23, 4  ;;  %v2551_v19 = vperm.slane %v2335_v39, 4 }
 0x105   :  { %3409 = vst [vmem:[#allocation22_spill] sm:$0xff] %v2452_v46  ;;  %v2466_v46 = vmul.f32 %v981_v53, %v2386_v56  ;;  %v2469_v51 = vmul.f32 %v981_v53, %v2389_v36  ;;  %v2472_v1 = vmul.f32 %v981_v53, %v2392_v28  ;;  %v2475_v42 = vmul.f32 %v981_v53, %v2395_v7 }
 0x106   :  { %v2478_v13 = vmul.f32 %v981_v53, %v2398_v0  ;;  %v2481_v15 = vmul.f32 %v981_v53, %v2401_v5  ;;  %v2484_v57 = vmul.f32 %v981_v53, %v2404_v2  ;;  %v2487_v58 = vmul.f32 %v981_v53, %v2407_v4  ;;  %3414 = vst [vmem:[#allocation27_spill] sm:$0xff] %v2530_v34 }
 0x107   :  { %v827_v38 = vadd.f32 %v819_v8, %v799_v60  ;;  %v828_v48 = vadd.f32 %v820_v49, %v800_v24  ;;  %v830_v53 = vadd.f32 %v822_v18, %v802_v41  ;;  %v832_v50 = vadd.f32 %v824_v45, %v804_v27  ;;  %3415 = vst [vmem:[#allocation28_spill] sm:$0xff] %v2533_v32 }
 0x108   :  { %3410 = vst [vmem:[#allocation23_spill] sm:$0xff] %v2478_v13  ;;  %v834_v54 = vadd.f32 %v826_v21, %v806_v29  ;;  %v2536_v4 = vperm.slane %v2320_v22, 4  ;;  %v2539_v2 = vperm.slane %v2323_v6, 4  ;;  %v2548_v29 = vperm.slane %v2332_v25, 4 }
 0x109   :  { %3411 = vst [vmem:[#allocation24_spill] sm:$0xff] %v2481_v15  ;;  %v847_v62 = vmul.f32 %v2530_v34, %v837_v10  ;;  %v848_v60 = vmul.f32 %v2533_v32, %v837_v10  ;;  %v851_v27 = vmul.f32 %v2542_v33, %v837_v10  ;;  %v852_v8 = vmul.f32 %v2545_v3, %v837_v10 }
 0x10a   :  { %3412 = vst [vmem:[#allocation25_spill] sm:$0xff] %v2484_v57  ;;  %v849_v24 = vmul.f32 %v2536_v4, %v837_v10  ;;  %v850_v41 = vmul.f32 %v2539_v2, %v837_v10  ;;  %v853_v49 = vmul.f32 %v2548_v29, %v837_v10  ;;  %v854_v17 = vmul.f32 %v2551_v19, %v837_v10 }
 0x10b   :  { %3413 = vst [vmem:[#allocation26_spill] sm:$0xff] %v2487_v58  ;;  %v855_v18 = vadd.f32 %v847_v62, %v827_v38  ;;  %v856_v52 = vadd.f32 %v848_v60, %v828_v48  ;;  %v859_v21 = vadd.f32 %v851_v27, %v831_v30  ;;  %v860_v5 = vadd.f32 %v852_v8, %v832_v50 }
 0x10c   :  { %3416 = vst [vmem:[#allocation29_spill] sm:$0xff] %v2536_v4  ;;  %v857_v45 = vadd.f32 %v849_v24, %v829_v11  ;;  %v858_v14 = vadd.f32 %v850_v41, %v830_v53  ;;  %v861_v0 = vadd.f32 %v853_v49, %v833_v20  ;;  %v862_v7 = vadd.f32 %v854_v17, %v834_v54  ;;  %v2582_v11 = vpop.permute.xlu1 %920 }
 0x10d   :  { %3417 = vst [vmem:[#allocation30_spill] sm:$0xff] %v2539_v2  ;;  %v2562_v28 = vperm.slane %v2314_v16, 5  ;;  %v2565_v36 = vperm.slane %v2317_v55, 5  ;;  %v2568_v56 = vperm.slane %v2320_v22, 5  ;;  %v2574_v10 = vperm.slane %v2326_v23, 5 }
 0x10e   :  { %3418 = vst [vmem:[#allocation31_spill] sm:$0xff] %v2542_v33  ;;  %v2577_v38 = vperm.slane %v2329_v61, 5  ;;  %v2580_v48 = vperm.slane %v2332_v25, 5  ;;  %v2585_v53 = vperm.slane %v2335_v39, 5  ;;  %v2604_v4 = vperm.slane %v2314_v16, 6 }
 0x10f   :  { %3419 = vst [vmem:[#allocation32_spill] sm:$0xff] %v2545_v3  ;;  %v875_v30 = vmul.f32 %v2562_v28, %v2298_v63  ;;  %v876_v50 = vmul.f32 %v2565_v36, %v2298_v63  ;;  %v877_v20 = vmul.f32 %v2568_v56, %v2298_v63  ;;  %v879_v62 = vmul.f32 %v2574_v10, %v2298_v63 }
 0x110   :  { %3420 = vst [vmem:[#allocation33_spill] sm:$0xff] %v2548_v29  ;;  %v2571_v29 = vperm.slane %v2323_v6, 5  ;;  %v880_v60 = vmul.f32 %v2577_v38, %v2298_v63  ;;  %v881_v24 = vmul.f32 %v2580_v48, %v2298_v63  ;;  %v882_v41 = vmul.f32 %v2585_v53, %v2298_v63 }
 0x111   :  { %3421 = vst [vmem:[#allocation34_spill] sm:$0xff] %v2551_v19  ;;  %v883_v27 = vadd.f32 %v875_v30, %v855_v18  ;;  %v884_v8 = vadd.f32 %v876_v50, %v856_v52  ;;  %v885_v49 = vadd.f32 %v877_v20, %v857_v45  ;;  %v887_v19 = vadd.f32 %v879_v62, %v859_v21 }
 0x112   :  { %3422 = vst [vmem:[#allocation35_spill] sm:$0xff] %v2562_v28  ;;  %v878_v54 = vmul.f32 %v2571_v29, %v2298_v63  ;;  %v888_v3 = vadd.f32 %v880_v60, %v860_v5  ;;  %v889_v33 = vadd.f32 %v881_v24, %v861_v0  ;;  %v890_v2 = vadd.f32 %v882_v41, %v862_v7  ;;  %v893_v0 = vpop.permute.xlu0 %892 }
 0x113   :  { %3423 = vst [vmem:[#allocation36_spill] sm:$0xff] %v2565_v36  ;;  %v2607_v32 = vperm.slane %v2317_v55, 6  ;;  %v2610_v34 = vperm.slane %v2320_v22, 6  ;;  %v2613_v58 = vperm.slane %v2323_v6, 6  ;;  %v2616_v63 = vperm.slane %v2326_v23, 6 }
 0x114   :  { %3424 = vst [vmem:[#allocation37_spill] sm:$0xff] %v2568_v56  ;;  %v886_v17 = vadd.f32 %v878_v54, %v858_v14  ;;  %v2619_v18 = vperm.slane %v2329_v61, 6  ;;  %v2622_v7 = vperm.slane %v2332_v25, 6  ;;  %v2625_v5 = vperm.slane %v2335_v39, 6  ;;  %v1041_v54 = vpop.permute.xlu2 %1040  ;;  %v961_v13 = vpop.permute.xlu1 %960 }
 0x115   :  { %3425 = vst [vmem:[#allocation38_spill] sm:$0xff] %v2571_v29  ;;  %v903_v52 = vmul.f32 %v2604_v4, %v893_v0  ;;  %v904_v45 = vmul.f32 %v2607_v32, %v893_v0  ;;  %v905_v14 = vmul.f32 %v2610_v34, %v893_v0  ;;  %v906_v21 = vmul.f32 %v2613_v58, %v893_v0 }
 0x116   :  { %3426 = vst [vmem:[#allocation39_spill] sm:$0xff] %v2574_v10  ;;  %v907_v30 = vmul.f32 %v2616_v63, %v893_v0  ;;  %v908_v50 = vmul.f32 %v2619_v18, %v893_v0  ;;  %v909_v20 = vmul.f32 %v2622_v7, %v893_v0  ;;  %v910_v62 = vmul.f32 %v2625_v5, %v893_v0 }
 0x117   :  { %3427 = vst [vmem:[#allocation40_spill] sm:$0xff] %v2577_v38  ;;  %v911_v60 = vadd.f32 %v903_v52, %v883_v27  ;;  %v912_v24 = vadd.f32 %v904_v45, %v884_v8  ;;  %v913_v41 = vadd.f32 %v905_v14, %v885_v49  ;;  %v914_v57 = vadd.f32 %v906_v21, %v886_v17 }
 0x118   :  { %3428 = vst [vmem:[#allocation41_spill] sm:$0xff] %v2580_v48  ;;  %v916_v15 = vadd.f32 %v908_v50, %v888_v3  ;;  %v2645_v0 = vmul.f32 %v1041_v54, %v2571_v29  ;;  %v2648_v27 = vmul.f32 %v1041_v54, %v2574_v10  ;;  %v2651_v3 = vmul.f32 %v1041_v54, %v2577_v38  ;;  %v3476_v38 = vld [vmem:[#allocation47_spill] sm:$0xff]  ;;  %v3478_v29 = vld [vmem:[#allocation49_spill] sm:$0xff] }
 0x119   :  { %3429 = vst [vmem:[#allocation42_spill] sm:$0xff] %v2585_v53  ;;  %v2663_v8 = vperm.slane %v2317_v55, 7  ;;  %v2666_v49 = vperm.slane %v2320_v22, 7  ;;  %v2669_v17 = vperm.slane %v2323_v6, 7  ;;  %v2672_v52 = vperm.slane %v2326_v23, 7 }
 0x11a   :  { %3430 = vst [vmem:[#allocation43_spill] sm:$0xff] %v2604_v4  ;;  %v915_v4 = vadd.f32 %v907_v30, %v887_v19  ;;  %v2660_v19 = vperm.slane %v2314_v16, 7  ;;  %v2675_v45 = vperm.slane %v2329_v61, 7  ;;  %v2678_v14 = vperm.slane %v2332_v25, 7  ;;  %v1001_v21 = vpop.permute.xlu0 %1000 }
 0x11b   :  { %3431 = vst [vmem:[#allocation44_spill] sm:$0xff] %v2607_v32  ;;  %v917_v32 = vadd.f32 %v909_v20, %v889_v33  ;;  %v2657_v33 = vmul.f32 %v1041_v54, %v2585_v53  ;;  %v2681_v16 = vperm.slane %v2335_v39, 7  ;;  %v932_v22 = vmul.f32 %v2663_v8, %v2582_v11  ;;  %v3474_v53 = vld [vmem:[#allocation22_spill] sm:$0xff] }
 0x11c   :  { %3432 = vst [vmem:[#allocation45_spill] sm:$0xff] %v2610_v34  ;;  %v918_v34 = vadd.f32 %v910_v62, %v890_v2  ;;  %v2654_v2 = vmul.f32 %v1041_v54, %v2580_v48  ;;  %v931_v55 = vmul.f32 %v2660_v19, %v2582_v11  ;;  %v933_v6 = vmul.f32 %v2666_v49, %v2582_v11  ;;  %v3475_v48 = vld [vmem:[#allocation58_spill] sm:$0xff] }
 0x11d   :  { %3433 = vst [vmem:[#allocation46_spill] sm:$0xff] %v2613_v58  ;;  %v2636_v58 = vmul.f32 %v1041_v54, %v2562_v28  ;;  %v934_v23 = vmul.f32 %v2669_v17, %v2582_v11  ;;  %v935_v61 = vmul.f32 %v2672_v52, %v2582_v11  ;;  %v936_v25 = vmul.f32 %v2675_v45, %v2582_v11 }
 0x11e   :  { %3434 = vst [vmem:[#allocation59_spill] sm:$0xff] %v2616_v63  ;;  %v2639_v63 = vmul.f32 %v1041_v54, %v2565_v36  ;;  %v937_v39 = vmul.f32 %v2678_v14, %v2582_v11  ;;  %v938_v30 = vmul.f32 %v2681_v16, %v2582_v11  ;;  %v2699_v50 = vadd.f32 %v931_v55, %v911_v60  ;;  %v3479_v36 = vld [vmem:[#allocation50_spill] sm:$0xff] }
 0x11f   :  { %3435 = vst [vmem:[#allocation60_spill] sm:$0xff] %v2619_v18  ;;  %v2701_v20 = vadd.f32 %v932_v22, %v912_v24  ;;  %v2705_v62 = vadd.f32 %v934_v23, %v914_v57  ;;  %v2709_v18 = vadd.f32 %v936_v25, %v916_v15  ;;  %v2719_v11 = vmul.f32 %v1001_v21, %v2493_v9  ;;  %v3462_v22 = vld [vmem:[#allocation6_spill] sm:$0xff]  ;;  %v3463_v23 = vld [vmem:[#allocation7_spill] sm:$0xff]  ;;  %v3464_v25 = vld [vmem:[#allocation8_spill] sm:$0xff] }
 0x120   :  { %3436 = vst [vmem:[#allocation61_spill] sm:$0xff] %v2622_v7  ;;  %v2642_v7 = vmul.f32 %v1041_v54, %v2568_v56  ;;  %v2703_v54 = vadd.f32 %v933_v6, %v913_v41  ;;  %v2722_v60 = vmul.f32 %v1001_v21, %v2496_v35  ;;  %v2725_v57 = vmul.f32 %v1001_v21, %v2499_v37 }
 0x121   :  { %3437 = vst [vmem:[#allocation62_spill] sm:$0xff] %v2625_v5  ;;  %v2707_v5 = vadd.f32 %v935_v61, %v915_v4  ;;  %v2728_v4 = vmul.f32 %v1001_v21, %v2502_v44  ;;  %v2731_v15 = vmul.f32 %v1001_v21, %v2505_v59  ;;  %v2739_v24 = vmul.f32 %v1001_v21, %v2511_v47 }
 0x122   :  { %3438 = vst [vmem:[#allocation63_spill] sm:$0xff] %v2636_v58  ;;  %v3473_v58 = vld [vmem:[#allocation21_spill] sm:$0xff] }
 0x123   :  { %3439 = vst [vmem:[#allocation64_spill] sm:$0xff] %v2639_v63  ;;  %v3472_v63 = vld [vmem:[#allocation20_spill] sm:$0xff] }
 0x124   :  { %3440 = vst [vmem:[#allocation65_spill] sm:$0xff] %v2642_v7  ;;  %v3471_v7 = vld [vmem:[#allocation19_spill] sm:$0xff] }
 0x125   :  { %3441 = vst [vmem:[#allocation66_spill] sm:$0xff] %v2645_v0  ;;  %v3470_v0 = vld [vmem:[#allocation18_spill] sm:$0xff] }
 0x126   :  { %3442 = vst [vmem:[#allocation67_spill] sm:$0xff] %v2648_v27  ;;  %v2716_v27 = vmul.f32 %v1001_v21, %v2490_v43 }
 0x127   :  { %3443 = vst [vmem:[#allocation68_spill] sm:$0xff] %v2651_v3  ;;  %v2713_v3 = vadd.f32 %v938_v30, %v918_v34  ;;  %v2734_v34 = vmul.f32 %v1001_v21, %v2508_v40  ;;  %v3465_v30 = vld [vmem:[#allocation9_spill] sm:$0xff] }
 0x128   :  { %3444 = vst [vmem:[#allocation69_spill] sm:$0xff] %v2654_v2  ;;  %v1101_v2 = vpop.permute.xlu2 %1100  ;;  %v3469_v21 = vld [vmem:[#allocation17_spill] sm:$0xff] }
 0x129   :  { %3445 = vst [vmem:[#allocation70_spill] sm:$0xff] %v2657_v33  ;;  %v2711_v33 = vadd.f32 %v937_v39, %v917_v32  ;;  %v2736_v32 = vpop.permute.xlu1 %1020  ;;  %v1103_v41 = vmul.f32 %v1101_v2, %v2338_v26  ;;  %v1104_v55 = vmul.f32 %v1101_v2, %v2341_v31  ;;  %v1105_v6 = vmul.f32 %v1101_v2, %v3462_v22 }
 0x12a   :  { %3446 = vst [vmem:[#allocation71_spill] sm:$0xff] %v2660_v19  ;;  %v1106_v61 = vmul.f32 %v1101_v2, %v3463_v23  ;;  %v1107_v39 = vmul.f32 %v1101_v2, %v3464_v25  ;;  %v965_v26 = vmul.f32 %v961_v13, %v3470_v0  ;;  %v966_v31 = vmul.f32 %v961_v13, %v3471_v7 }
 0x12b   :  { %3447 = vst [vmem:[#allocation72_spill] sm:$0xff] %v2663_v8  ;;  %v967_v22 = vmul.f32 %v961_v13, %v3472_v63  ;;  %v968_v23 = vmul.f32 %v961_v13, %v3473_v58  ;;  %v969_v25 = vmul.f32 %v961_v13, %v3474_v53 }
 0x12c   :  { %3448 = vst [vmem:[#allocation73_spill] sm:$0xff] %v2666_v49  ;;  %v974_v56 = vadd.f32 %v966_v31, %v3478_v29  ;;  %v3482_v49 = vld [vmem:[#allocation53_spill] sm:$0xff]  ;;  %v3484_v29 = vld [vmem:[#allocation24_spill] sm:$0xff] }
 0x12d   :  { %3449 = vst [vmem:[#allocation74_spill] sm:$0xff] %v2669_v17  ;;  %v975_v28 = vadd.f32 %v967_v22, %v3479_v36  ;;  %v1113_v17 = vpop.permute.xlu0 %1112  ;;  %v3485_v36 = vld [vmem:[#allocation25_spill] sm:$0xff]  ;;  %v3486_v22 = vld [vmem:[#allocation26_spill] sm:$0xff] }
 0x12e   :  { %3450 = vst [vmem:[#allocation75_spill] sm:$0xff] %v2672_v52 }
 0x12f   :  { %3451 = vst [vmem:[#allocation76_spill] sm:$0xff] %v2675_v45  ;;  %v3481_v45 = vld [vmem:[#allocation52_spill] sm:$0xff] }
 0x130   :  { %3452 = vst [vmem:[#allocation77_spill] sm:$0xff] %v2678_v14  ;;  %v977_v52 = vadd.f32 %v969_v25, %v3481_v45  ;;  %v3493_v25 = vld [vmem:[#allocation33_spill] sm:$0xff] }
 0x131   :  { %3453 = vst [vmem:[#allocation78_spill] sm:$0xff] %v2681_v16  ;;  %v3480_v16 = vld [vmem:[#allocation51_spill] sm:$0xff] }
 0x132   :  { %3454 = vst [vmem:[#allocation79_spill] sm:$0xff] %v2699_v50  ;;  %v964_v50 = vmul.f32 %v961_v13, %v3469_v21  ;;  %v976_v14 = vadd.f32 %v968_v23, %v3480_v16  ;;  %v997_v31 = vadd.f32 %v3485_v36, %v977_v52  ;;  %v1153_v16 = vpop.permute.xlu2 %1152 }
 0x133   :  { %3455 = vst [vmem:[#allocation80_spill] sm:$0xff] %v2701_v20 }
 0x134   :  { %3456 = vst [vmem:[#allocation81_spill] sm:$0xff] %v2703_v54  ;;  %v3468_v54 = vld [vmem:[#allocation16_spill] sm:$0xff] }
 0x135   :  { %3457 = vst [vmem:[#allocation82_spill] sm:$0xff] %v2705_v62  ;;  %v963_v20 = vmul.f32 %v961_v13, %v3468_v54  ;;  %v1115_v23 = vmul.f32 %v1113_v17, %v3468_v54 }
 0x136   :  { %3458 = vst [vmem:[#allocation83_spill] sm:$0xff] %v2707_v5  ;;  %v3467_v5 = vld [vmem:[#allocation57_spill] sm:$0xff] }
 0x137   :  { %3459 = vst [vmem:[#allocation84_spill] sm:$0xff] %v2709_v18  ;;  %v1110_v62 = vmul.f32 %v1101_v2, %v3467_v5  ;;  %v972_v5 = vadd.f32 %v964_v50, %v3476_v38  ;;  %v994_v38 = vadd.f32 %v2475_v42, %v974_v56  ;;  %v3483_v50 = vld [vmem:[#allocation23_spill] sm:$0xff]  ;;  %v1120_v56 = vmul.f32 %v1113_v17, %v3473_v58  ;;  %v2780_v42 = vpop.permute.xlu1 %1060 }
 0x138   :  { %3460 = vst [vmem:[#allocation85_spill] sm:$0xff] %v2711_v33  ;;  %v3466_v33 = vld [vmem:[#allocation56_spill] sm:$0xff]  ;;  %v2783_v52 = vadd.f32 %v1115_v23, %v1103_v41  ;;  %v2809_v41 = vmul.f32 %v1153_v16, %v2499_v37 }
 0x139   :  { %3461 = vst [vmem:[#allocation86_spill] sm:$0xff] %v2713_v3  ;;  %v1108_v3 = vmul.f32 %v1101_v2, %v3465_v30  ;;  %v1109_v18 = vmul.f32 %v1101_v2, %v3466_v33  ;;  %v970_v30 = vmul.f32 %v961_v13, %v2455_v12  ;;  %v971_v33 = vadd.f32 %v963_v20, %v3475_v48  ;;  %v3477_v2 = vld [vmem:[#allocation48_spill] sm:$0xff] }
 0x13a   :  { %v973_v10 = vadd.f32 %v965_v26, %v3477_v2  ;;  %v992_v13 = vadd.f32 %v2469_v51, %v972_v5  ;;  %v995_v20 = vadd.f32 %v3483_v50, %v975_v28  ;;  %v996_v26 = vadd.f32 %v3484_v29, %v976_v14  ;;  %v3494_v5 = vld [vmem:[#allocation34_spill] sm:$0xff] }
 0x13b   :  { %v978_v8 = vadd.f32 %v970_v30, %v3482_v49  ;;  %v991_v19 = vadd.f32 %v2466_v46, %v971_v33  ;;  %v1116_v49 = vmul.f32 %v1113_v17, %v3469_v21  ;;  %v1117_v46 = vmul.f32 %v1113_v17, %v3470_v0  ;;  %v3491_v21 = vld [vmem:[#allocation31_spill] sm:$0xff]  ;;  %v1081_v30 = vpop.permute.xlu0 %1080  ;;  %v1193_v33 = vpop.permute.xlu2 %1192 }
 0x13c   :  { %v993_v48 = vadd.f32 %v2472_v1, %v973_v10  ;;  %v1118_v51 = vmul.f32 %v1113_v17, %v3471_v7  ;;  %v1119_v1 = vmul.f32 %v1113_v17, %v3472_v63  ;;  %v1121_v28 = vmul.f32 %v1113_v17, %v3474_v53 }
 0x13d   :  { %v998_v45 = vadd.f32 %v3486_v22, %v978_v8  ;;  %v1122_v10 = vmul.f32 %v1113_v17, %v2455_v12  ;;  %v2785_v8 = vadd.f32 %v1116_v49, %v1104_v55  ;;  %v2787_v14 = vadd.f32 %v1117_v46, %v1105_v6  ;;  %v3499_v49 = vld [vmem:[#allocation73_spill] sm:$0xff] }
 0x13e   :  { %v2789_v54 = vadd.f32 %v1118_v51, %v1106_v61  ;;  %v2791_v0 = vadd.f32 %v1119_v1, %v1107_v39  ;;  %v2793_v7 = vadd.f32 %v1120_v56, %v1108_v3  ;;  %v2795_v63 = vadd.f32 %v1121_v28, %v1109_v18  ;;  %v3487_v61 = vld [vmem:[#allocation27_spill] sm:$0xff]  ;;  %v3488_v39 = vld [vmem:[#allocation28_spill] sm:$0xff]  ;;  %v3501_v51 = vld [vmem:[#allocation74_spill] sm:$0xff] }
 0x13f   :  { %v2797_v58 = vadd.f32 %v1122_v10, %v1110_v62  ;;  %v2800_v53 = vmul.f32 %v1153_v16, %v2490_v43  ;;  %v2803_v12 = vmul.f32 %v1153_v16, %v2493_v9  ;;  %v2806_v17 = vmul.f32 %v1153_v16, %v2496_v35  ;;  %v1133_v36 = vpop.permute.xlu1 %1132  ;;  %v3503_v1 = vld [vmem:[#allocation75_spill] sm:$0xff]  ;;  %v3505_v28 = vld [vmem:[#allocation76_spill] sm:$0xff] }
 0x140   :  { %v2812_v55 = vmul.f32 %v1153_v16, %v2502_v44  ;;  %v2815_v18 = vmul.f32 %v1153_v16, %v2505_v59  ;;  %v2818_v3 = vmul.f32 %v1153_v16, %v2508_v40  ;;  %v2821_v43 = vmul.f32 %v1153_v16, %v2511_v47  ;;  %v3495_v16 = vld [vmem:[#allocation71_spill] sm:$0xff] }
 0x141   :  { %v1011_v9 = vadd.f32 %v2716_v27, %v991_v19  ;;  %v1012_v35 = vadd.f32 %v2719_v11, %v992_v13  ;;  %v1013_v62 = vadd.f32 %v2722_v60, %v993_v48  ;;  %v1014_v37 = vadd.f32 %v2725_v57, %v994_v38  ;;  %v3489_v19 = vld [vmem:[#allocation29_spill] sm:$0xff]  ;;  %v3490_v60 = vld [vmem:[#allocation30_spill] sm:$0xff] }
 0x142   :  { %v1015_v44 = vadd.f32 %v2728_v4, %v995_v20  ;;  %v1016_v6 = vadd.f32 %v2731_v15, %v996_v26  ;;  %v1017_v59 = vadd.f32 %v2734_v34, %v997_v31  ;;  %v1018_v40 = vadd.f32 %v2739_v24, %v998_v45  ;;  %v3492_v15 = vld [vmem:[#allocation32_spill] sm:$0xff] }
 0x143   :  { %v1023_v47 = vmul.f32 %v2736_v32, %v3487_v61  ;;  %v1024_v27 = vmul.f32 %v2736_v32, %v3488_v39  ;;  %v1025_v11 = vmul.f32 %v2736_v32, %v3489_v19  ;;  %v1026_v57 = vmul.f32 %v2736_v32, %v3490_v60  ;;  %v3497_v45 = vld [vmem:[#allocation72_spill] sm:$0xff] }
 0x144   :  { %v1027_v4 = vmul.f32 %v2736_v32, %v3491_v21  ;;  %v1028_v34 = vmul.f32 %v2736_v32, %v3492_v15  ;;  %v1029_v24 = vmul.f32 %v2736_v32, %v3493_v25  ;;  %v1030_v2 = vmul.f32 %v2736_v32, %v3494_v5 }
 0x145   :  { %v1031_v13 = vadd.f32 %v1023_v47, %v1011_v9  ;;  %v1032_v48 = vadd.f32 %v1024_v27, %v1012_v35  ;;  %v1033_v38 = vadd.f32 %v1025_v11, %v1013_v62  ;;  %v1034_v50 = vadd.f32 %v1026_v57, %v1014_v37  ;;  %v3507_v9 = vld [vmem:[#allocation77_spill] sm:$0xff]  ;;  %v3509_v62 = vld [vmem:[#allocation78_spill] sm:$0xff] }
 0x146   :  { %v1035_v20 = vadd.f32 %v1027_v4, %v1015_v44  ;;  %v1036_v29 = vadd.f32 %v1028_v34, %v1016_v6  ;;  %v1037_v26 = vadd.f32 %v1029_v24, %v1017_v59  ;;  %v1038_v31 = vadd.f32 %v1030_v2, %v1018_v40  ;;  %v3511_v44 = vld [vmem:[#allocation35_spill] sm:$0xff]  ;;  %v3513_v59 = vld [vmem:[#allocation36_spill] sm:$0xff]  ;;  %v3515_v47 = vld [vmem:[#allocation37_spill] sm:$0xff] }
 0x147   :  { %v2848_v22 = vmul.f32 %v1081_v30, %v3495_v16  ;;  %v2851_v23 = vmul.f32 %v1081_v30, %v3497_v45  ;;  %v2854_v46 = vmul.f32 %v1081_v30, %v3499_v49  ;;  %v2857_v32 = vmul.f32 %v1081_v30, %v3501_v51  ;;  %v3517_v11 = vld [vmem:[#allocation38_spill] sm:$0xff]  ;;  %v3519_v4 = vld [vmem:[#allocation39_spill] sm:$0xff]  ;;  %v3521_v24 = vld [vmem:[#allocation40_spill] sm:$0xff] }
 0x148   :  { %v2860_v56 = vmul.f32 %v1081_v30, %v3503_v1  ;;  %v2863_v10 = vmul.f32 %v1081_v30, %v3505_v28  ;;  %v2866_v35 = vmul.f32 %v1081_v30, %v3507_v9  ;;  %v2869_v37 = vmul.f32 %v1081_v30, %v3509_v62  ;;  %v3523_v30 = vld [vmem:[#allocation41_spill] sm:$0xff] }
 0x149   :  { %3496 = vst [vmem:[#allocation6_spill] sm:$0xff] %v2848_v22  ;;  %v2872_v6 = vmul.f32 %v1193_v33, %v3511_v44  ;;  %v2875_v40 = vmul.f32 %v1193_v33, %v3513_v59  ;;  %v2878_v27 = vmul.f32 %v1193_v33, %v3515_v47  ;;  %v2881_v57 = vmul.f32 %v1193_v33, %v3517_v11  ;;  %v3525_v44 = vld [vmem:[#allocation42_spill] sm:$0xff]  ;;  %v3527_v59 = vld [vmem:[#allocation63_spill] sm:$0xff] }
 0x14a   :  { %3498 = vst [vmem:[#allocation7_spill] sm:$0xff] %v2851_v23  ;;  %v2884_v34 = vmul.f32 %v1193_v33, %v3519_v4  ;;  %v2887_v2 = vmul.f32 %v1193_v33, %v3521_v24  ;;  %v3530_v11 = vld [vmem:[#allocation66_spill] sm:$0xff]  ;;  %v3533_v24 = vld [vmem:[#allocation69_spill] sm:$0xff] }
 0x14b   :  { %3500 = vst [vmem:[#allocation8_spill] sm:$0xff] %v2854_v46  ;;  %v3534_v46 = vld [vmem:[#allocation70_spill] sm:$0xff] }
 0x14c   :  { %3502 = vst [vmem:[#allocation9_spill] sm:$0xff] %v2857_v32 }
 0x14d   :  { %3504 = vst [vmem:[#allocation56_spill] sm:$0xff] %v2860_v56  ;;  %v3531_v56 = vld [vmem:[#allocation67_spill] sm:$0xff] }
 0x14e   :  { %3506 = vst [vmem:[#allocation57_spill] sm:$0xff] %v2863_v10  ;;  %v1055_v4 = vadd.f32 %v3531_v56, %v1035_v20  ;;  %v3541_v56 = vld [vmem:[#allocation61_spill] sm:$0xff] }
 0x14f   :  { %3508 = vst [vmem:[#allocation16_spill] sm:$0xff] %v2866_v35  ;;  %v3528_v35 = vld [vmem:[#allocation64_spill] sm:$0xff] }
 0x150   :  { %3510 = vst [vmem:[#allocation17_spill] sm:$0xff] %v2869_v37  ;;  %v2890_v37 = vmul.f32 %v1193_v33, %v3523_v30  ;;  %v1052_v47 = vadd.f32 %v3528_v35, %v1032_v48  ;;  %v1058_v30 = vadd.f32 %v3534_v46, %v1038_v31  ;;  %v3539_v35 = vld [vmem:[#allocation59_spill] sm:$0xff]  ;;  %v1069_v31 = vmul.f32 %v2780_v42, %v3541_v56  ;;  %v1233_v46 = vpop.permute.xlu2 %1232 }
 0x151   :  { %3512 = vst [vmem:[#allocation18_spill] sm:$0xff] %v2872_v6  ;;  %v2893_v6 = vmul.f32 %v1193_v33, %v3525_v44  ;;  %v3536_v44 = vld [vmem:[#allocation44_spill] sm:$0xff]  ;;  %v1067_v20 = vmul.f32 %v2780_v42, %v3539_v35 }
 0x152   :  { %3514 = vst [vmem:[#allocation19_spill] sm:$0xff] %v2875_v40  ;;  %v1051_v40 = vadd.f32 %v3527_v59, %v1031_v13  ;;  %v1064_v13 = vmul.f32 %v2780_v42, %v3536_v44  ;;  %v3537_v59 = vld [vmem:[#allocation45_spill] sm:$0xff] }
 0x153   :  { %3516 = vst [vmem:[#allocation20_spill] sm:$0xff] %v2878_v27  ;;  %v3529_v27 = vld [vmem:[#allocation65_spill] sm:$0xff]  ;;  %v1065_v48 = vmul.f32 %v2780_v42, %v3537_v59  ;;  %v2927_v22 = vadd.f32 %v1067_v20, %v1055_v4  ;;  %v2936_v59 = vmul.f32 %v1233_v46, %v3495_v16  ;;  %v2957_v16 = vmul.f32 %v1233_v46, %v3509_v62  ;;  %v3544_v4 = vld [vmem:[#allocation55_spill] sm:$0xff] }
 0x154   :  { %3518 = vst [vmem:[#allocation21_spill] sm:$0xff] %v2881_v57  ;;  %v1053_v10 = vadd.f32 %v3529_v27, %v1033_v38  ;;  %v1054_v57 = vadd.f32 %v3530_v11, %v1034_v50  ;;  %v3538_v38 = vld [vmem:[#allocation46_spill] sm:$0xff] }
 0x155   :  { %3520 = vst [vmem:[#allocation22_spill] sm:$0xff] %v2884_v34  ;;  %v3532_v34 = vld [vmem:[#allocation68_spill] sm:$0xff]  ;;  %v1066_v50 = vmul.f32 %v2780_v42, %v3538_v38  ;;  %v3542_v27 = vld [vmem:[#allocation62_spill] sm:$0xff]  ;;  %v1173_v38 = vpop.permute.xlu1 %1172 }
 0x156   :  { %3522 = vst [vmem:[#allocation58_spill] sm:$0xff] %v2887_v2  ;;  %v1056_v32 = vadd.f32 %v3532_v34, %v1036_v29  ;;  %v1057_v2 = vadd.f32 %v3533_v24, %v1037_v26  ;;  %v3540_v29 = vld [vmem:[#allocation60_spill] sm:$0xff]  ;;  %v1070_v34 = vmul.f32 %v2780_v42, %v3542_v27  ;;  %v2921_v24 = vadd.f32 %v1064_v13, %v1052_v47 }
 0x157   :  { %3524 = vst [vmem:[#allocation47_spill] sm:$0xff] %v2890_v37  ;;  %v3535_v37 = vld [vmem:[#allocation43_spill] sm:$0xff]  ;;  %v1068_v26 = vmul.f32 %v2780_v42, %v3540_v29  ;;  %v2925_v23 = vadd.f32 %v1066_v50, %v1054_v57  ;;  %v2951_v57 = vmul.f32 %v1233_v46, %v3505_v28  ;;  %v3548_v50 = vld [vmem:[#allocation13_spill] sm:$0xff]  ;;  %v3549_v28 = vld [vmem:[#allocation14_spill] sm:$0xff] }
 0x158   :  { %3526 = vst [vmem:[#allocation48_spill] sm:$0xff] %v2893_v6  ;;  %v1063_v33 = vmul.f32 %v2780_v42, %v3535_v37  ;;  %v2923_v6 = vadd.f32 %v1065_v48, %v1053_v10  ;;  %v2931_v29 = vadd.f32 %v1069_v31, %v1057_v2  ;;  %v2933_v56 = vadd.f32 %v1070_v34, %v1058_v30  ;;  %v3545_v30 = vld [vmem:[#allocation10_spill] sm:$0xff]  ;;  %v3547_v48 = vld [vmem:[#allocation12_spill] sm:$0xff]  ;;  %v3550_v31 = vld [vmem:[#allocation15_spill] sm:$0xff] }
 0x159   :  { %v2929_v35 = vadd.f32 %v1068_v26, %v1056_v32  ;;  %v2939_v42 = vmul.f32 %v1233_v46, %v3497_v45  ;;  %v2942_v10 = vmul.f32 %v1233_v46, %v3499_v49  ;;  %v2948_v32 = vmul.f32 %v1233_v46, %v3503_v1  ;;  %v3543_v45 = vld [vmem:[#allocation54_spill] sm:$0xff] }
 0x15a   :  { %v2919_v11 = vadd.f32 %v1063_v33, %v1051_v40  ;;  %v2945_v40 = vmul.f32 %v1233_v46, %v3501_v51  ;;  %v2954_v2 = vmul.f32 %v1233_v46, %v3507_v9  ;;  %v1135_v47 = vmul.f32 %v1133_v36, %v3543_v45  ;;  %v3546_v51 = vld [vmem:[#allocation11_spill] sm:$0xff] }
 0x15b   :  { %v1136_v49 = vmul.f32 %v1133_v36, %v3544_v4  ;;  %v1137_v33 = vmul.f32 %v1133_v36, %v3545_v30  ;;  %v1138_v13 = vmul.f32 %v1133_v36, %v3546_v51  ;;  %v1139_v1 = vmul.f32 %v1133_v36, %v3547_v48 }
 0x15c   :  { %v1140_v20 = vmul.f32 %v1133_v36, %v3548_v50  ;;  %v1141_v26 = vmul.f32 %v1133_v36, %v3549_v28  ;;  %v1142_v9 = vmul.f32 %v1133_v36, %v3550_v31  ;;  %v1143_v34 = vadd.f32 %v1135_v47, %v2783_v52  ;;  %v3554_v31 = vld [vmem:[#allocation60_spill] sm:$0xff] }
 0x15d   :  { %v1144_v62 = vadd.f32 %v1136_v49, %v2785_v8  ;;  %v1145_v46 = vadd.f32 %v1137_v33, %v2787_v14  ;;  %v1146_v45 = vadd.f32 %v1138_v13, %v2789_v54  ;;  %v1147_v4 = vadd.f32 %v1139_v1, %v2791_v0  ;;  %v1213_v47 = vpop.permute.xlu1 %1212 }
 0x15e   :  { %v1148_v30 = vadd.f32 %v1140_v20, %v2793_v7  ;;  %v1149_v51 = vadd.f32 %v1141_v26, %v2795_v63  ;;  %v1150_v48 = vadd.f32 %v1142_v9, %v2797_v58  ;;  %v1163_v50 = vadd.f32 %v2800_v53, %v1143_v34 }
 0x15f   :  { %v1164_v36 = vadd.f32 %v2803_v12, %v1144_v62  ;;  %v1165_v52 = vadd.f32 %v2806_v17, %v1145_v46  ;;  %v1166_v8 = vadd.f32 %v2809_v41, %v1146_v45  ;;  %v1167_v14 = vadd.f32 %v2812_v55, %v1147_v4  ;;  %v3556_v62 = vld [vmem:[#allocation6_spill] sm:$0xff]  ;;  %v3557_v45 = vld [vmem:[#allocation7_spill] sm:$0xff] }
 0x160   :  { %v1168_v54 = vadd.f32 %v2815_v18, %v1148_v30  ;;  %v1169_v0 = vadd.f32 %v2818_v3, %v1149_v51  ;;  %v1170_v7 = vadd.f32 %v2821_v43, %v1150_v48  ;;  %v1175_v63 = vmul.f32 %v1173_v38, %v3487_v61  ;;  %v3559_v30 = vld [vmem:[#allocation9_spill] sm:$0xff]  ;;  %v3560_v48 = vld [vmem:[#allocation56_spill] sm:$0xff] }
 0x161   :  { %v1176_v58 = vmul.f32 %v1173_v38, %v3488_v39  ;;  %v1177_v53 = vmul.f32 %v1173_v38, %v3489_v19  ;;  %v1178_v12 = vmul.f32 %v1173_v38, %v3490_v60  ;;  %v1179_v17 = vmul.f32 %v1173_v38, %v3491_v21  ;;  %v3551_v21 = vld [vmem:[#allocation45_spill] sm:$0xff] }
 0x162   :  { %v1180_v41 = vmul.f32 %v1173_v38, %v3492_v15  ;;  %v1181_v55 = vmul.f32 %v1173_v38, %v3493_v25  ;;  %v1182_v18 = vmul.f32 %v1173_v38, %v3494_v5  ;;  %v1183_v3 = vadd.f32 %v1175_v63, %v1163_v50  ;;  %v3552_v15 = vld [vmem:[#allocation46_spill] sm:$0xff]  ;;  %v3553_v25 = vld [vmem:[#allocation59_spill] sm:$0xff]  ;;  %v3555_v38 = vld [vmem:[#allocation61_spill] sm:$0xff] }
 0x163   :  { %v1184_v49 = vadd.f32 %v1176_v58, %v1164_v36  ;;  %v1185_v43 = vadd.f32 %v1177_v53, %v1165_v52  ;;  %v1186_v33 = vadd.f32 %v1178_v12, %v1166_v8  ;;  %v1187_v61 = vadd.f32 %v1179_v17, %v1167_v14  ;;  %v3561_v36 = vld [vmem:[#allocation57_spill] sm:$0xff]  ;;  %v3568_v53 = vld [vmem:[#allocation22_spill] sm:$0xff] }
 0x164   :  { %v1188_v13 = vadd.f32 %v1180_v41, %v1168_v54  ;;  %v1189_v39 = vadd.f32 %v1181_v55, %v1169_v0  ;;  %v1190_v1 = vadd.f32 %v1182_v18, %v1170_v7  ;;  %v1215_v19 = vmul.f32 %v1213_v47, %v3535_v37  ;;  %v3564_v54 = vld [vmem:[#allocation18_spill] sm:$0xff]  ;;  %v3565_v0 = vld [vmem:[#allocation19_spill] sm:$0xff]  ;;  %v3567_v58 = vld [vmem:[#allocation21_spill] sm:$0xff] }
 0x165   :  { %v1216_v60 = vmul.f32 %v1213_v47, %v3536_v44  ;;  %v1217_v20 = vmul.f32 %v1213_v47, %v3551_v21  ;;  %v1218_v28 = vmul.f32 %v1213_v47, %v3552_v15  ;;  %v1219_v26 = vmul.f32 %v1213_v47, %v3553_v25  ;;  %v3558_v44 = vld [vmem:[#allocation8_spill] sm:$0xff]  ;;  %v3570_v41 = vld [vmem:[#allocation47_spill] sm:$0xff] }
 0x166   :  { %v1220_v5 = vmul.f32 %v1213_v47, %v3554_v31  ;;  %v1221_v9 = vmul.f32 %v1213_v47, %v3555_v38  ;;  %v1222_v34 = vmul.f32 %v1213_v47, %v3542_v27  ;;  %v1091_v46 = vadd.f32 %v3556_v62, %v2919_v11  ;;  %v3562_v27 = vld [vmem:[#allocation16_spill] sm:$0xff]  ;;  %v3563_v11 = vld [vmem:[#allocation17_spill] sm:$0xff]  ;;  %v3575_v38 = vld [vmem:[#allocation82_spill] sm:$0xff] }
 0x167   :  { %v1092_v37 = vadd.f32 %v3557_v45, %v2921_v24  ;;  %v1093_v4 = vadd.f32 %v3558_v44, %v2923_v6  ;;  %v1094_v51 = vadd.f32 %v3559_v30, %v2925_v23  ;;  %v1095_v50 = vadd.f32 %v3560_v48, %v2927_v22  ;;  %v3566_v6 = vld [vmem:[#allocation20_spill] sm:$0xff]  ;;  %v3569_v22 = vld [vmem:[#allocation58_spill] sm:$0xff]  ;;  %v3578_v62 = vld [vmem:[#allocation85_spill] sm:$0xff] }
 0x168   :  { %v1096_v52 = vadd.f32 %v3561_v36, %v2929_v35  ;;  %v1097_v8 = vadd.f32 %v3562_v27, %v2931_v29  ;;  %v1098_v14 = vadd.f32 %v3563_v11, %v2933_v56  ;;  %v1203_v24 = vadd.f32 %v3564_v54, %v1183_v3  ;;  %v3571_v55 = vld [vmem:[#allocation48_spill] sm:$0xff]  ;;  %v3579_v45 = vld [vmem:[#allocation86_spill] sm:$0xff] }
 0x169   :  { %v1204_v7 = vadd.f32 %v3565_v0, %v1184_v49  ;;  %v1205_v63 = vadd.f32 %v3566_v6, %v1185_v43  ;;  %v1206_v23 = vadd.f32 %v3567_v58, %v1186_v33  ;;  %v1207_v12 = vadd.f32 %v3568_v53, %v1187_v61 }
 0x16a   :  { %v1208_v17 = vadd.f32 %v3569_v22, %v1188_v13  ;;  %v1209_v35 = vadd.f32 %v3570_v41, %v1189_v39  ;;  %v1210_v47 = vadd.f32 %v3571_v55, %v1190_v1  ;;  %v1223_v29 = vadd.f32 %v1215_v19, %v1203_v24 }
 0x16b   :  { %v1224_v18 = vadd.f32 %v1216_v60, %v1204_v7  ;;  %v1225_v21 = vadd.f32 %v1217_v20, %v1205_v63  ;;  %v1226_v56 = vadd.f32 %v1218_v28, %v1206_v23  ;;  %v1227_v15 = vadd.f32 %v1219_v26, %v1207_v12  ;;  %v3572_v20 = vld [vmem:[#allocation79_spill] sm:$0xff]  ;;  %v3573_v26 = vld [vmem:[#allocation80_spill] sm:$0xff]  ;;  %v1273_v7 = vpop.permute.xlu1 %1272 }
 0x16c   :  { %v1228_v3 = vadd.f32 %v1220_v5, %v1208_v17  ;;  %v1229_v25 = vadd.f32 %v1221_v9, %v1209_v35  ;;  %v1230_v49 = vadd.f32 %v1222_v34, %v1210_v47  ;;  %v1243_v43 = vadd.f32 %v2936_v59, %v1223_v29  ;;  %v3574_v5 = vld [vmem:[#allocation81_spill] sm:$0xff]  ;;  %v3576_v9 = vld [vmem:[#allocation83_spill] sm:$0xff]  ;;  %v3577_v34 = vld [vmem:[#allocation84_spill] sm:$0xff] }
 0x16d   :  { %v1244_v33 = vadd.f32 %v2939_v42, %v1224_v18  ;;  %v1245_v61 = vadd.f32 %v2942_v10, %v1225_v21  ;;  %v1246_v13 = vadd.f32 %v2945_v40, %v1226_v56  ;;  %v1247_v39 = vadd.f32 %v2948_v32, %v1227_v15 }
 0x16e   :  { %v1248_v1 = vadd.f32 %v2951_v57, %v1228_v3  ;;  %v1249_v19 = vadd.f32 %v2954_v2, %v1229_v25  ;;  %v1250_v60 = vadd.f32 %v2957_v16, %v1230_v49  ;;  %v1251_v28 = vsub.f32 %v3572_v20, %v1091_v46 }
 0x16f   :  { %v1252_v31 = vsub.f32 %v3573_v26, %v1092_v37  ;;  %v1253_v59 = vsub.f32 %v3574_v5, %v1093_v4  ;;  %v1254_v42 = vsub.f32 %v3575_v38, %v1094_v51  ;;  %v1255_v10 = vsub.f32 %v3576_v9, %v1095_v50 }
 0x170   :  { %v1256_v40 = vsub.f32 %v3577_v34, %v1096_v52  ;;  %v1257_v32 = vsub.f32 %v3578_v62, %v1097_v8  ;;  %v1258_v57 = vsub.f32 %v3579_v45, %v1098_v14  ;;  %v1259_v44 = vsub.f32 %v1251_v28, %v1243_v43 }
 0x171   :  { %v1260_v2 = vsub.f32 %v1252_v31, %v1244_v33  ;;  %v1261_v30 = vsub.f32 %v1253_v59, %v1245_v61  ;;  %v1262_v16 = vsub.f32 %v1254_v42, %v1246_v13  ;;  %v1263_v48 = vsub.f32 %v1255_v10, %v1247_v39 }
 0x172   :  { %v1264_v36 = vsub.f32 %v1256_v40, %v1248_v1  ;;  %v1265_v27 = vsub.f32 %v1257_v32, %v1249_v19  ;;  %v1266_v11 = vsub.f32 %v1258_v57, %v1250_v60  ;;  %v1268_v54 = vadd.f32 %v1259_v44, %v1093_v4 }
 0x173   :  { %v1277_v24 = vadd.f32 %v1260_v2, %v1094_v51  ;;  %v1281_v0 = vadd.f32 %v1261_v30, %v1091_v46  ;;  %v1285_v6 = vadd.f32 %v1262_v16, %v1092_v37  ;;  %v1289_v63 = vadd.f32 %v1263_v48, %v1097_v8 }
 0x174   :  { %v1293_v58 = vadd.f32 %v1264_v36, %v1098_v14  ;;  %v1297_v23 = vadd.f32 %v1265_v27, %v1095_v50  ;;  %v1269_v53 = vadd.f32 %v1268_v54, %v1244_v33  ;;  %v1301_v17 = vadd.f32 %v1266_v11, %v1096_v52 }
 0x175   :  { %v1278_v12 = vadd.f32 %v1277_v24, %v1243_v43  ;;  %v1282_v22 = vadd.f32 %v1281_v0, %v1246_v13  ;;  %v1286_v41 = vadd.f32 %v1285_v6, %v1245_v61  ;;  %v1290_v35 = vadd.f32 %v1289_v63, %v1248_v1 }
 0x176   :  { %v1294_v55 = vadd.f32 %v1293_v58, %v1247_v39  ;;  %v1275_v47 = vadd.f32 %v1273_v7, %v1269_v53  ;;  %v1298_v21 = vadd.f32 %v1297_v23, %v1250_v60  ;;  %v1302_v4 = vadd.f32 %v1301_v17, %v1249_v19 }
 0x177   :  { %v1279_v29 = vadd.f32 %v1278_v12, %v1273_v7  ;;  %v1283_v18 = vadd.f32 %v1282_v22, %v1273_v7  ;;  %v1287_v56 = vadd.f32 %v1286_v41, %v1273_v7  ;;  %v1291_v46 = vadd.f32 %v1290_v35, %v1273_v7 }
 0x178   :  { %1276 = vst [vmem:[%s3070_s7] sm:$0x7] %v1275_v47  ;;  %v1295_v37 = vadd.f32 %v1294_v55, %v1273_v7  ;;  %v1299_v51 = vadd.f32 %v1298_v21, %v1273_v7  ;;  %v1303_v50 = vadd.f32 %v1302_v4, %v1273_v7 }
 0x179   :  { %1280 = vst [vmem:[%s3070_s7 + $0x4] sm:$0x7] %v1279_v29 }
 0x17a   :  { %1284 = vst [vmem:[%s3070_s7 + $0x8] sm:$0x7] %v1283_v18 }
 0x17b   :  { %1288 = vst [vmem:[%s3070_s7 + $0xc] sm:$0x7] %v1287_v56 }
 0x17c   :  { %1292 = vst [vmem:[%s3070_s7 + $0x10] sm:$0x7] %v1291_v46 }
 0x17d   :  { %1296 = vst [vmem:[%s3070_s7 + $0x14] sm:$0x7] %v1295_v37 }
 0x17e   :  { %1300 = vst [vmem:[%s3070_s7 + $0x18] sm:$0x7] %v1299_v51 }
 0x17f   :  { %1304 = vst [vmem:[%s3070_s7 + $0x1c] sm:$0x7] %v1303_v50 }
 0x180   :  { %1309 = vsyncpa [#allocation4], 1 }

</bundles_post_ra>
